<compile_context>
chip_gen: v6e
topology: v6e:2x2x1
jax: 0.10.0
libtpu: 0.0.40
codegen_flags: <defaults>
</compile_context>

<pallas_src>
import functools

import jax
import jax.numpy as jnp
from jax.experimental import pallas as pl
from jax.experimental.pallas import tpu as pltpu

_LANE = 128


def _conv_kernel(x_ref, w_ref, b_ref, o_ref, *,
                 kh, kw, stride, th, ow, c_in, apply_relu):
    """Fused reflection-padded conv row tile.

    x_ref : (Hp, Wp, C_in)            bf16 padded image (whole image, VMEM)
    w_ref : (KH, KW, C_in, C_out_pad) bf16 weights
    b_ref : (1, C_out_pad)            f32 bias
    o_ref : (TH, OW, C_out_pad)       output row tile
    """
    r = pl.program_id(1)                                  # row-tile index
    row0 = pl.multiple_of(r * (th * stride), th * stride)
    th_in = (th - 1) * stride + kh                        # input rows incl. halo

    x = x_ref[pl.ds(row0, th_in), :, :]                   # (th_in, Wp, C_in) bf16

    m = th * ow
    cp = o_ref.shape[-1]

    # Accumulate KH*KW shifted taps: (m, C_in) x (C_in, C_out_pad) on the MXU
    # with f32 accumulation.  No im2col matrix is ever materialized.
    acc = None
    for i in range(kh):
        for j in range(kw):
            if stride == 1:
                patch = x[i:i + th, j:j + ow, :]                    # (th, ow, c_in)
            else:
                patch = x[i:i + (th - 1) * stride + 1:stride,
                          j:j + (ow - 1) * stride + 1:stride, :]
            contrib = jnp.dot(patch.reshape(m, c_in), w_ref[i, j],
                              preferred_element_type=jnp.float32)
            acc = contrib if acc is None else acc + contrib

    acc = acc + b_ref[...]                                 # (1, cp) broadcast, f32
    if apply_relu:
        acc = jnp.maximum(acc, 0.0)
    o_ref[...] = acc.reshape(th, ow, cp).astype(o_ref.dtype)


def conv_layer_forward(x, weight, bias, *, stride, is_last=False,
                       row_tile=None, compute_dtype=jnp.bfloat16):
    """Forward pass of ConvLayer (ReflectionPad2d -> Conv2d -> optional ReLU).

    x      : (N, C_in, H, W)        float32, NCHW (PyTorch convention)
    weight : (C_out, C_in, KH, KW)  float32 (PyTorch Conv2d layout)
    bias   : (C_out,)               float32
    """
    N, C_in, H, W = x.shape
    C_out, C_in_w, KH, KW = weight.shape
    assert C_in_w == C_in
    pad_h = KH // 2
    pad_w = KW // 2

    # --- layout glue (wrapper): NCHW -> NHWC, reflect pad, bf16 cast ----------
    x_nhwc = jnp.transpose(x, (0, 2, 3, 1))
    xp = jnp.pad(x_nhwc, ((0, 0), (pad_h, pad_h), (pad_w, pad_w), (0, 0)),
                 mode="reflect").astype(compute_dtype)
    Hp, Wp = H + 2 * pad_h, W + 2 * pad_w
    OH = (Hp - KH) // stride + 1
    OW = (Wp - KW) // stride + 1

    # Lane-dense output channels: pad C_out to a multiple of 128.
    C_out_pad = ((C_out + _LANE - 1) // _LANE) * _LANE
    w_t = jnp.transpose(weight, (2, 3, 1, 0))              # (KH, KW, C_in, C_out)
    if C_out_pad != C_out:
        w_t = jnp.pad(w_t, ((0, 0), (0, 0), (0, 0), (0, C_out_pad - C_out)))
    w_t = w_t.astype(compute_dtype)
    b2 = jnp.pad(bias, (0, C_out_pad - C_out)).reshape(1, C_out_pad).astype(jnp.float32)

    # --- output-row tile size (must divide OH; target ~512 output pixels) -----
    if row_tile is None:
        target = max(1, 512 // max(OW, 1))
        row_tile = 1
        for d in range(1, min(OH, target) + 1):
            if OH % d == 0:
                row_tile = d
    else:
        row_tile = max(1, min(row_tile, OH))
        while OH % row_tile != 0:
            row_tile -= 1
    TH = row_tile

    kernel = functools.partial(
        _conv_kernel, kh=KH, kw=KW, stride=stride, th=TH, ow=OW, c_in=C_in,
        apply_relu=not is_last)

    itemsize = jnp.dtype(compute_dtype).itemsize
    flops = 2 * N * OH * OW * KH * KW * C_in * C_out_pad
    bytes_accessed = (N * Hp * Wp * C_in * itemsize
                      + KH * KW * C_in * C_out_pad * itemsize
                      + C_out_pad * 4
                      + N * OH * OW * C_out_pad * 4)

    out = pl.pallas_call(
        kernel,
        out_shape=jax.ShapeDtypeStruct((N, OH, OW, C_out_pad), x.dtype),
        grid_spec=pltpu.PrefetchScalarGridSpec(
            num_scalar_prefetch=0,
            grid=(N, OH // TH),
            in_specs=[
                # Whole padded image for batch n; block index constant across
                # row tiles so it is DMA'd once per batch element and reused.
                pl.BlockSpec((None, Hp, Wp, C_in), lambda n, r: (n, 0, 0, 0)),
                pl.BlockSpec((KH, KW, C_in, C_out_pad), lambda n, r: (0, 0, 0, 0)),
                pl.BlockSpec((1, C_out_pad), lambda n, r: (0, 0)),
            ],
            out_specs=pl.BlockSpec((None, TH, OW, C_out_pad),
                                   lambda n, r: (n, r, 0, 0)),
        ),
        compiler_params=pltpu.CompilerParams(
            dimension_semantics=("parallel", "parallel"),
            vmem_limit_bytes=32 * 1024 * 1024),
        cost_estimate=pl.CostEstimate(flops=int(flops), transcendentals=0,
                                      bytes_accessed=int(bytes_accessed)),
    )(xp, w_t, b2)

    out = out[:, :, :, :C_out]                             # drop channel padding
    return jnp.transpose(out, (0, 3, 1, 2))                # NHWC -> NCHW at boundary


def _reference(x, weight, bias, *, stride, is_last):
    """Pure-JAX f32 reference (reflect pad + conv2d + relu)."""
    pad_h = weight.shape[2] // 2
    pad_w = weight.shape[3] // 2
    xp = jnp.pad(x, ((0, 0), (0, 0), (pad_h, pad_h), (pad_w, pad_w)), mode="reflect")
    out = jax.lax.conv_general_dilated(
        xp, weight, window_strides=(stride, stride), padding="VALID",
        dimension_numbers=("NCHW", "OIHW", "NCHW"))
    out = out + bias.reshape(1, -1, 1, 1)
    if not is_last:
        out = jnp.maximum(out, 0.0)
    return out


if __name__ == "__main__":
    # N=2, C_in=4, H=W=16, C_out=8, kernel_size=3, stride=1, is_last=False.
    key = jax.random.PRNGKey(0)
    kx, kw_, kb = jax.random.split(key, 3)

    N, C_in, H, W = 2, 4, 16, 16
    C_out, KH, KW = 8, 3, 3
    stride = 1
    is_last = False

    x = jax.random.normal(kx, (N, C_in, H, W), dtype=jnp.float32)
    fan_in = C_in * KH * KW
    bound = 1.0 / (fan_in ** 0.5)
    weight = jax.random.uniform(kw_, (C_out, C_in, KH, KW),
                                minval=-bound, maxval=bound, dtype=jnp.float32)
    bias = jax.random.uniform(kb, (C_out,), minval=-bound, maxval=bound,
                              dtype=jnp.float32)

    # row_tile=8 exercises the multi-row-tile path (grid = (2, 2)).
    out = conv_layer_forward(x, weight, bias, stride=stride, is_last=is_last,
                             row_tile=8)
    out = jax.block_until_ready(out)

    ref = _reference(x, weight, bias, stride=stride, is_last=is_last)
    assert out.shape == ref.shape == (N, C_out, H, W)
    # bf16 inputs with f32 accumulation -> loosened tolerance vs. the f32 ref.
    assert jnp.allclose(out, ref, atol=5e-2, rtol=5e-2), \
        float(jnp.max(jnp.abs(out - ref)))

    print("KERNEL_OK")
</pallas_src>

<mosaic_0001>
module attributes {stable_mosaic.version = 11 : i64} {
  func.func @_conv_kernel(%arg0: i32, %arg1: i32, %arg2: memref<1x18x18x4xbf16, #tpu.memory_space<vmem>>, %arg3: memref<3x3x4x128xbf16, #tpu.memory_space<vmem>>, %arg4: memref<1x128xf32, #tpu.memory_space<vmem>>, %arg5: memref<1x8x16x128xf32, #tpu.memory_space<vmem>>) attributes {dimension_semantics = [#tpu.dimension_semantics<parallel>, #tpu.dimension_semantics<parallel>], iteration_bounds = array<i64: 2, 2>, scalar_prefetch = 0 : i64, scratch_operands = 0 : i64, tpu.core_type = #tpu.core_type<tc>, window_params = [{transform_indices = @transform_0, window_bounds = array<i64: 1, 18, 18, 4>}, {pipeline_mode = #tpu.pipeline_mode<synchronous>, transform_indices = @transform_1, window_bounds = array<i64: 3, 3, 4, 128>}, {pipeline_mode = #tpu.pipeline_mode<synchronous>, transform_indices = @transform_2, window_bounds = array<i64: 1, 128>}, {transform_indices = @transform_3, window_bounds = array<i64: 1, 8, 16, 128>}]} {
    %c8_i32 = arith.constant 8 : i32
    %0 = arith.muli %arg1, %c8_i32 : i32
    %1 = tpu.assume_multiple %0, 8 : i32
    %c0 = arith.constant 0 : index
    %2 = arith.index_cast %1 : i32 to index
    %c0_0 = arith.constant 0 : index
    %c0_1 = arith.constant 0 : index
    %3 = vector.load %arg2[%c0, %2, %c0_0, %c0_1] : memref<1x18x18x4xbf16, #tpu.memory_space<vmem>>, vector<1x10x18x4xbf16>
    %4 = vector.shape_cast %3 : vector<1x10x18x4xbf16> to vector<10x18x4xbf16>
    %5 = vector.extract_strided_slice %4 {offsets = [0, 0, 0], sizes = [8, 16, 4], strides = [1, 1, 1]} : vector<10x18x4xbf16> to vector<8x16x4xbf16>
    %6 = vector.shape_cast %5 : vector<8x16x4xbf16> to vector<128x4xbf16>
    %c0_2 = arith.constant 0 : index
    %c0_3 = arith.constant 0 : index
    %c0_4 = arith.constant 0 : index
    %c0_5 = arith.constant 0 : index
    %7 = vector.load %arg3[%c0_2, %c0_3, %c0_4, %c0_5] : memref<3x3x4x128xbf16, #tpu.memory_space<vmem>>, vector<1x1x4x128xbf16>
    %8 = vector.shape_cast %7 : vector<1x1x4x128xbf16> to vector<4x128xbf16>
    %cst = arith.constant dense<0.000000e+00> : vector<128x128xf32>
    %9 = tpu.matmul %6, %8, %cst {dimension_numbers = #tpu.dot_dimension_numbers<[1], [0], [0], [1], [0, 0, 1, 1], [], []>} : vector<128x4xbf16>, vector<4x128xbf16>, vector<128x128xf32> -> vector<128x128xf32>
    %10 = vector.extract_strided_slice %4 {offsets = [0, 1, 0], sizes = [8, 16, 4], strides = [1, 1, 1]} : vector<10x18x4xbf16> to vector<8x16x4xbf16>
    %11 = vector.shape_cast %10 : vector<8x16x4xbf16> to vector<128x4xbf16>
    %c0_6 = arith.constant 0 : index
    %c1 = arith.constant 1 : index
    %c0_7 = arith.constant 0 : index
    %c0_8 = arith.constant 0 : index
    %12 = vector.load %arg3[%c0_6, %c1, %c0_7, %c0_8] : memref<3x3x4x128xbf16, #tpu.memory_space<vmem>>, vector<1x1x4x128xbf16>
    %13 = vector.shape_cast %12 : vector<1x1x4x128xbf16> to vector<4x128xbf16>
    %cst_9 = arith.constant dense<0.000000e+00> : vector<128x128xf32>
    %14 = tpu.matmul %11, %13, %cst_9 {dimension_numbers = #tpu.dot_dimension_numbers<[1], [0], [0], [1], [0, 0, 1, 1], [], []>} : vector<128x4xbf16>, vector<4x128xbf16>, vector<128x128xf32> -> vector<128x128xf32>
    %15 = arith.addf %9, %14 : vector<128x128xf32>
    %16 = vector.extract_strided_slice %4 {offsets = [0, 2, 0], sizes = [8, 16, 4], strides = [1, 1, 1]} : vector<10x18x4xbf16> to vector<8x16x4xbf16>
    %17 = vector.shape_cast %16 : vector<8x16x4xbf16> to vector<128x4xbf16>
    %c0_10 = arith.constant 0 : index
    %c2 = arith.constant 2 : index
    %c0_11 = arith.constant 0 : index
    %c0_12 = arith.constant 0 : index
    %18 = vector.load %arg3[%c0_10, %c2, %c0_11, %c0_12] : memref<3x3x4x128xbf16, #tpu.memory_space<vmem>>, vector<1x1x4x128xbf16>
    %19 = vector.shape_cast %18 : vector<1x1x4x128xbf16> to vector<4x128xbf16>
    %cst_13 = arith.constant dense<0.000000e+00> : vector<128x128xf32>
    %20 = tpu.matmul %17, %19, %cst_13 {dimension_numbers = #tpu.dot_dimension_numbers<[1], [0], [0], [1], [0, 0, 1, 1], [], []>} : vector<128x4xbf16>, vector<4x128xbf16>, vector<128x128xf32> -> vector<128x128xf32>
    %21 = arith.addf %15, %20 : vector<128x128xf32>
    %22 = vector.extract_strided_slice %4 {offsets = [1, 0, 0], sizes = [8, 16, 4], strides = [1, 1, 1]} : vector<10x18x4xbf16> to vector<8x16x4xbf16>
    %23 = vector.shape_cast %22 : vector<8x16x4xbf16> to vector<128x4xbf16>
    %c1_14 = arith.constant 1 : index
    %c0_15 = arith.constant 0 : index
    %c0_16 = arith.constant 0 : index
    %c0_17 = arith.constant 0 : index
    %24 = vector.load %arg3[%c1_14, %c0_15, %c0_16, %c0_17] : memref<3x3x4x128xbf16, #tpu.memory_space<vmem>>, vector<1x1x4x128xbf16>
    %25 = vector.shape_cast %24 : vector<1x1x4x128xbf16> to vector<4x128xbf16>
    %cst_18 = arith.constant dense<0.000000e+00> : vector<128x128xf32>
    %26 = tpu.matmul %23, %25, %cst_18 {dimension_numbers = #tpu.dot_dimension_numbers<[1], [0], [0], [1], [0, 0, 1, 1], [], []>} : vector<128x4xbf16>, vector<4x128xbf16>, vector<128x128xf32> -> vector<128x128xf32>
    %27 = arith.addf %21, %26 : vector<128x128xf32>
    %28 = vector.extract_strided_slice %4 {offsets = [1, 1, 0], sizes = [8, 16, 4], strides = [1, 1, 1]} : vector<10x18x4xbf16> to vector<8x16x4xbf16>
    %29 = vector.shape_cast %28 : vector<8x16x4xbf16> to vector<128x4xbf16>
    %c1_19 = arith.constant 1 : index
    %c1_20 = arith.constant 1 : index
    %c0_21 = arith.constant 0 : index
    %c0_22 = arith.constant 0 : index
    %30 = vector.load %arg3[%c1_19, %c1_20, %c0_21, %c0_22] : memref<3x3x4x128xbf16, #tpu.memory_space<vmem>>, vector<1x1x4x128xbf16>
    %31 = vector.shape_cast %30 : vector<1x1x4x128xbf16> to vector<4x128xbf16>
    %cst_23 = arith.constant dense<0.000000e+00> : vector<128x128xf32>
    %32 = tpu.matmul %29, %31, %cst_23 {dimension_numbers = #tpu.dot_dimension_numbers<[1], [0], [0], [1], [0, 0, 1, 1], [], []>} : vector<128x4xbf16>, vector<4x128xbf16>, vector<128x128xf32> -> vector<128x128xf32>
    %33 = arith.addf %27, %32 : vector<128x128xf32>
    %34 = vector.extract_strided_slice %4 {offsets = [1, 2, 0], sizes = [8, 16, 4], strides = [1, 1, 1]} : vector<10x18x4xbf16> to vector<8x16x4xbf16>
    %35 = vector.shape_cast %34 : vector<8x16x4xbf16> to vector<128x4xbf16>
    %c1_24 = arith.constant 1 : index
    %c2_25 = arith.constant 2 : index
    %c0_26 = arith.constant 0 : index
    %c0_27 = arith.constant 0 : index
    %36 = vector.load %arg3[%c1_24, %c2_25, %c0_26, %c0_27] : memref<3x3x4x128xbf16, #tpu.memory_space<vmem>>, vector<1x1x4x128xbf16>
    %37 = vector.shape_cast %36 : vector<1x1x4x128xbf16> to vector<4x128xbf16>
    %cst_28 = arith.constant dense<0.000000e+00> : vector<128x128xf32>
    %38 = tpu.matmul %35, %37, %cst_28 {dimension_numbers = #tpu.dot_dimension_numbers<[1], [0], [0], [1], [0, 0, 1, 1], [], []>} : vector<128x4xbf16>, vector<4x128xbf16>, vector<128x128xf32> -> vector<128x128xf32>
    %39 = arith.addf %33, %38 : vector<128x128xf32>
    %40 = vector.extract_strided_slice %4 {offsets = [2, 0, 0], sizes = [8, 16, 4], strides = [1, 1, 1]} : vector<10x18x4xbf16> to vector<8x16x4xbf16>
    %41 = vector.shape_cast %40 : vector<8x16x4xbf16> to vector<128x4xbf16>
    %c2_29 = arith.constant 2 : index
    %c0_30 = arith.constant 0 : index
    %c0_31 = arith.constant 0 : index
    %c0_32 = arith.constant 0 : index
    %42 = vector.load %arg3[%c2_29, %c0_30, %c0_31, %c0_32] : memref<3x3x4x128xbf16, #tpu.memory_space<vmem>>, vector<1x1x4x128xbf16>
    %43 = vector.shape_cast %42 : vector<1x1x4x128xbf16> to vector<4x128xbf16>
    %cst_33 = arith.constant dense<0.000000e+00> : vector<128x128xf32>
    %44 = tpu.matmul %41, %43, %cst_33 {dimension_numbers = #tpu.dot_dimension_numbers<[1], [0], [0], [1], [0, 0, 1, 1], [], []>} : vector<128x4xbf16>, vector<4x128xbf16>, vector<128x128xf32> -> vector<128x128xf32>
    %45 = arith.addf %39, %44 : vector<128x128xf32>
    %46 = vector.extract_strided_slice %4 {offsets = [2, 1, 0], sizes = [8, 16, 4], strides = [1, 1, 1]} : vector<10x18x4xbf16> to vector<8x16x4xbf16>
    %47 = vector.shape_cast %46 : vector<8x16x4xbf16> to vector<128x4xbf16>
    %c2_34 = arith.constant 2 : index
    %c1_35 = arith.constant 1 : index
    %c0_36 = arith.constant 0 : index
    %c0_37 = arith.constant 0 : index
    %48 = vector.load %arg3[%c2_34, %c1_35, %c0_36, %c0_37] : memref<3x3x4x128xbf16, #tpu.memory_space<vmem>>, vector<1x1x4x128xbf16>
    %49 = vector.shape_cast %48 : vector<1x1x4x128xbf16> to vector<4x128xbf16>
    %cst_38 = arith.constant dense<0.000000e+00> : vector<128x128xf32>
    %50 = tpu.matmul %47, %49, %cst_38 {dimension_numbers = #tpu.dot_dimension_numbers<[1], [0], [0], [1], [0, 0, 1, 1], [], []>} : vector<128x4xbf16>, vector<4x128xbf16>, vector<128x128xf32> -> vector<128x128xf32>
    %51 = arith.addf %45, %50 : vector<128x128xf32>
    %52 = vector.extract_strided_slice %4 {offsets = [2, 2, 0], sizes = [8, 16, 4], strides = [1, 1, 1]} : vector<10x18x4xbf16> to vector<8x16x4xbf16>
    %53 = vector.shape_cast %52 : vector<8x16x4xbf16> to vector<128x4xbf16>
    %c2_39 = arith.constant 2 : index
    %c2_40 = arith.constant 2 : index
    %c0_41 = arith.constant 0 : index
    %c0_42 = arith.constant 0 : index
    %54 = vector.load %arg3[%c2_39, %c2_40, %c0_41, %c0_42] : memref<3x3x4x128xbf16, #tpu.memory_space<vmem>>, vector<1x1x4x128xbf16>
    %55 = vector.shape_cast %54 : vector<1x1x4x128xbf16> to vector<4x128xbf16>
    %cst_43 = arith.constant dense<0.000000e+00> : vector<128x128xf32>
    %56 = tpu.matmul %53, %55, %cst_43 {dimension_numbers = #tpu.dot_dimension_numbers<[1], [0], [0], [1], [0, 0, 1, 1], [], []>} : vector<128x4xbf16>, vector<4x128xbf16>, vector<128x128xf32> -> vector<128x128xf32>
    %57 = arith.addf %51, %56 : vector<128x128xf32>
    %c0_44 = arith.constant 0 : index
    %c0_45 = arith.constant 0 : index
    %58 = vector.load %arg4[%c0_44, %c0_45] : memref<1x128xf32, #tpu.memory_space<vmem>>, vector<1x128xf32>
    %59 = vector.broadcast %58 : vector<1x128xf32> to vector<128x128xf32>
    %60 = arith.addf %57, %59 : vector<128x128xf32>
    %cst_46 = arith.constant 0.000000e+00 : f32
    %61 = vector.broadcast %cst_46 : f32 to vector<128x128xf32>
    %62 = arith.maximumf %60, %61 : vector<128x128xf32>
    %63 = vector.shape_cast %62 : vector<128x128xf32> to vector<8x16x128xf32>
    %c0_47 = arith.constant 0 : index
    %c0_48 = arith.constant 0 : index
    %c0_49 = arith.constant 0 : index
    %c0_50 = arith.constant 0 : index
    %64 = vector.load %arg5[%c0_47, %c0_48, %c0_49, %c0_50] : memref<1x8x16x128xf32, #tpu.memory_space<vmem>>, vector<1x8x16x128xf32>
    %65 = vector.shape_cast %64 : vector<1x8x16x128xf32> to vector<8x16x128xf32>
    %66 = vector.shape_cast %63 : vector<8x16x128xf32> to vector<1x8x16x128xf32>
    tpu.vector_store %arg5[%c0_47, %c0_48, %c0_49, %c0_50], %66 {strides = array<i32>} : memref<1x8x16x128xf32, #tpu.memory_space<vmem>>, vector<1x8x16x128xf32>,
    return
  }
  func.func @transform_0(%arg0: i32, %arg1: i32) -> (i32, i32, i32, i32) {
    %c0_i32 = arith.constant 0 : i32
    %c0_i32_0 = arith.constant 0 : i32
    %c0_i32_1 = arith.constant 0 : i32
    %c0_i32_2 = arith.constant 0 : i32
    return %arg0, %c0_i32, %c0_i32_0, %c0_i32_1 : i32, i32, i32, i32
  }
  func.func @transform_1(%arg0: i32, %arg1: i32) -> (i32, i32, i32, i32) {
    %c0_i32 = arith.constant 0 : i32
    %c0_i32_0 = arith.constant 0 : i32
    %c0_i32_1 = arith.constant 0 : i32
    %c0_i32_2 = arith.constant 0 : i32
    %c0_i32_3 = arith.constant 0 : i32
    return %c0_i32, %c0_i32_0, %c0_i32_1, %c0_i32_2 : i32, i32, i32, i32
  }
  func.func @transform_2(%arg0: i32, %arg1: i32) -> (i32, i32) {
    %c0_i32 = arith.constant 0 : i32
    %c0_i32_0 = arith.constant 0 : i32
    %c0_i32_1 = arith.constant 0 : i32
    return %c0_i32, %c0_i32_0 : i32, i32
  }
  func.func @transform_3(%arg0: i32, %arg1: i32) -> (i32, i32, i32, i32) {
    %c0_i32 = arith.constant 0 : i32
    %c0_i32_0 = arith.constant 0 : i32
    %c0_i32_1 = arith.constant 0 : i32
    return %arg0, %arg1, %c0_i32, %c0_i32_0 : i32, i32, i32, i32
  }
}

</mosaic_0001>

<bundles_post_ra>
// kernel: tpu_custom_call.1
= control target key start
LH: loop header
LB: loop body
LE: loop exit
PB: predicated region body
PF: predicated region fallthrough
CT: control target
= control target key end

     0   :  { %8 = vsyncpa [#allocation3], 0  ;;  %s3432_s0 = inlined_call_operand.vmem [shape: bf16[2,18,18,4], index: 0, kind: input, shape index: {}]   ;;  %s3433_s1 = inlined_call_operand.vmem [shape: bf16[3,3,4,128], index: 1, kind: input, shape index: {}]   ;;  %s3434_s2 = inlined_call_operand.vmem [shape: f32[1,128], index: 2, kind: input, shape index: {}]   ;;  %s3435_s3 = inlined_call_operand.hbm [shape: f32[2,16,16,128], index: 3, kind: output, shape index: {}]  }
   0x1   :  { %10 = vsyncpa [#allocation3 + $0x1], 0  ;;  %s2522_s12 = smov 0   ;;  %s2524_s13 = smov 0  }
   0x2   :  { %s2526_s14 = smov 0   ;;  %s2528_s15 = smov 0  }
   0x3   :  { %s2530_s16 = smov 0   ;;  %s2532_s17 = smov 0  }
   0x4   :  { %s2534_s18 = smov 0   ;;  %s2536_s19 = smov 0  }
   0x5 LB: > { %s1926_s20 = sadd.s32 4294967295, %s2497_s19   ;;  %s1927_s21 = sadd.s32 4294967294, %s2497_s19   ;;  %s2497_s19 = sphi %s2536_s19, %s16_s19   ;;  %s2493_s18 = sphi %s2534_s18, %s3492_s18   ;;  %s2489_s17 = sphi %s2532_s17, %s3491_s17   ;;  %s2485_s16 = sphi %s2530_s16, %s3490_s16   ;;  %s2481_s15 = sphi %s2528_s15, %s3489_s15   ;;  %s2477_s14 = sphi %s2526_s14, %s3488_s14   ;;  %s2473_s13 = sphi %s2524_s13, %s3487_s13   ;;  %s2469_s12 = sphi %s2522_s12, %s3486_s12  }
   0x6   : > { %s25_s22 = sadd.s32 1, %s2489_s17  ;;  %s28_s23 = sadd.s32 1, %s2493_s18 }
   0x7   : > { %p26_p0 = scmp.ge.s32.totalorder %s25_s22, 2  ;;  %p115_p1 = scmp.ne.s32.totalorder %s2477_s14, %s2473_s13 }
   0x8   : > { %p116_p2 = scmp.eq.s32.totalorder %s1926_s20, 3  ;;  %p121_p5 = scmp.ne.s32.totalorder %s2473_s13, %s2469_s12 }
   0x9   : > { %s3494_s22 = smov (%p26_p0, %s25_s22), 0  ;;  %s3496_s23 = smov (!%p26_p0, %s28_s23), %s2493_s18 }
   0xa   : > { %s101_s24 = ssub.s32 %s2489_s17, %s3494_s22  ;;  %p2573_p3 = por %p116_p2, %p115_p1 }
   0xb   : > { %p30_p4 = scmp.ge.s32.totalorder %s3496_s23, 2  ;;  %p122_p6 = scmp.eq.s32.totalorder %s1927_s21, 3 }
   0xc   : > { %p1930_p7 = scmp.ge.s32.totalorder %s2497_s19, 1  ;;  %p154_p9 = scmp.lt.s32.totalorder %s2497_s19, 5 }
   0xd   : > { %s3498_s23 = smov (%p30_p4, %s3496_s23), 0  ;;  %p2582_p8 = por %p122_p6, %p121_p5 }
   0xe   : > { %s100_s27 = ssub.s32 %s2493_s18, %s3498_s23  ;;  %s105_s28 = sadd.s32 1, %s2477_s14 }
   0xf   : > { %s102_s29 = sor.u32 %s101_s24, %s100_s27  ;;  %p155_p10 = pnand %p1930_p7, %p154_p9 }
  0x10   : > { %p103_p11 = scmp.eq.s32.totalorder %s102_s29, 0 }
  0x11   : > { %158 = sbr.rel (%p155_p10) target bundleno = 420 (0x1a4), region = 32 }
  0x12   : > { %s2591_s30 = scalar_select %p103_p11, %s2477_s14, %s105_s28  }
  0x16   : > { %v1936_v0 = vld [vmem:[%s3433_s1 + $0x2] sm:$0x3]  ;;  %vm466_vm0 = vcmask 1041408   ;;  %p178_p12 = scmp.lt.s32.totalorder %s2485_s16, 1  ;;  %v219_v2 = vld [vmem:[%s3433_s1] sm:$0x3] }
  0x17   : > { %2312 = vmatprep.subr.msk.bf16.mxu1 %vm466_vm0, %v1936_v0  ;;  %2311 = vmatprep.subr.msk.bf16.mxu0 %vm466_vm0, %v1936_v0  ;;  %v468_v1 = vsel %vm466_vm0, %v1936_v0, 0  ;;  %v1977_v3 = vld [vmem:[%s3433_s1 + $0x4] sm:$0x3]  ;;  %s2064_s11 = smul.u32 96, %s2481_s15  ;;  %vm220_vm1 = vsmask.f32 3328 }
  0x18   : > { %2310 = vmatpush3.bf16.msra.mxu1 %v468_v1  ;;  %2148 = vmatpush3.bf16.msra.mxu0 %v468_v1  ;;  %s179_s6 = scalar_select %p178_p12, %s2485_s16, 1  ;;  %vm221_vm2 = vsmask.f32 7440  ;;  %vm441_vm3 = vcmask 31744   ;;  %v2639_v15 = vsel %vm466_vm0, %v219_v2, 0  ;;  %v2659_v34 = vsel %vm466_vm0, %v1977_v3, 0 }
  0x19   : > { %2313 = vmatprep.subr.msk.bf16.mxu1 %vm466_vm0, %v219_v2  ;;  %2314 = vmatprep.subr.msk.bf16.mxu0 %vm466_vm0, %v1977_v3  ;;  %vm2654_vm4 = vmor %vm220_vm1, %vm221_vm2  ;;  %vm739_vm5 = vcmask 1042432   ;;  %vm740_vm6 = vcmask 1046532   ;;  %s2060_s7 = sshll.u32 %s2485_s16, 5  ;;  %s2499_s24 = smov [#allocation2]  }
  0x1a   : > { %s2321_s20 = smul.u32 216, %s179_s6  ;;  %vm2802_vm7 = vmor %vm739_vm5, %vm740_vm6  ;;  %s2065_s6 = sshll.u32 %s2481_s15, 4 }
  0x1b   : > { %s1845_s8 = sadd.s32 %s2065_s6, %s2060_s7 }
  0x1c   : > { %s182_s27 = scalar_lea.vmem %s3432_s0, %s2321_s20  ;;  %s2061_s15 = sshll.u32 %s1845_s8, 7 }
  0x1d   : > { %s2613_s28 = scalar_lea.vmem %s182_s27, %s2064_s11  ;;  %s175_s27 = sand.u32 1, %s2473_s13  }
  0x1e   : > { %v2616_v4 = vld [vmem:[%s2613_s28] sm:$0xf]  ;;  %v2619_v5 = vld [vmem:[%s2613_s28 + $0x4] sm:$0xf]  ;;  %v2622_v6 = vld [vmem:[%s2613_s28 + $0x8] sm:$0x1]  ;;  %s3373_s11 = scalar_lea.hbm %s3435_s3, %s2061_s15 }
  0x1f   : > { %v224_v7 = vshrl.u32 %v2616_v4, 16  ;;  %v227_v8 = vshll.u32 %v2616_v4, 16  ;;  %v233_v9 = vshll.u32 %v2619_v5, 16  ;;  %v237_v10 = vshrl.u32 %v2619_v5, 16  ;;  %v2629_v11 = vld [vmem:[%s2613_s28 + $0x30] sm:$0xf] }
  0x20   : > { %v243_v12 = vshll.u32 %v2622_v6, 16  ;;  %v2633_v13 = vld [vmem:[%s2613_s28 + $0x34] sm:$0xf]  ;;  %v2636_v14 = vld [vmem:[%s2613_s28 + $0x38] sm:$0x1]  ;;  %v320_v21 = vshrl.u32 %v2629_v11, 16 }
  0x21   : > { %v226_v16 = vrot.slane %v224_v7, 4  ;;  %v229_v17 = vrot.slane %v227_v8, 5  ;;  %v235_v18 = vrot.slane %v233_v9, 5  ;;  %v239_v19 = vrot.slane %v237_v10, 4  ;;  %v2647_v28 = vld [vmem:[%s2613_s28 + $0xc] sm:$0xf] }
  0x22   : > { %v245_v20 = vrot.slane %v243_v12, 5  ;;  %v323_v22 = vshll.u32 %v2629_v11, 16  ;;  %v329_v23 = vshll.u32 %v2633_v13, 16  ;;  %v333_v26 = vshrl.u32 %v2633_v13, 16  ;;  %v2650_v29 = vld [vmem:[%s2613_s28 + $0x10] sm:$0xf] }
  0x23   : > { %v230_v24 = vor.u32 %v229_v17, %v226_v16  ;;  %v240_v25 = vor.u32 %v239_v19, %v235_v18  ;;  %v339_v27 = vshll.u32 %v2636_v14, 16  ;;  %v322_v31 = vrot.slane %v320_v21, 4  ;;  %v2662_v40 = vld [vmem:[%s2613_s28 + $0x14] sm:$0x1]  ;;  %v2673_v52 = vld [vmem:[%s2613_s28 + $0x3c] sm:$0xf] }
  0x24   : > { %v325_v32 = vrot.slane %v323_v22, 5  ;;  %v331_v33 = vrot.slane %v329_v23, 5  ;;  %v335_v37 = vrot.slane %v333_v26, 4  ;;  %v248_v41 = vshrl.u32 %v2647_v28, 16  ;;  %v2677_v57 = vld [vmem:[%s2613_s28 + $0x40] sm:$0xf] }
  0x25   : > { %v231_v35 = vrot.slane %v230_v24, 4  ;;  %v241_v36 = vrot.slane %v240_v25, 4  ;;  %v341_v38 = vrot.slane %v339_v27, 5  ;;  %v251_v42 = vshll.u32 %v2647_v28, 16  ;;  %v2685_v62 = vld [vmem:[%s2613_s28 + $0x44] sm:$0x1] }
  0x26   : > { %v326_v39 = vor.u32 %v325_v32, %v322_v31  ;;  %v257_v43 = vshll.u32 %v2650_v29, 16  ;;  %v336_v46 = vor.u32 %v335_v37, %v331_v33  ;;  %v261_v47 = vshrl.u32 %v2650_v29, 16  ;;  %v2691_v3 = vld [vmem:[%s2613_s28 + $0x18] sm:$0xf]  ;;  %v2700_v19 = vld [vmem:[%s2613_s28 + $0x1c] sm:$0xf] }
  0x27   : > { %v236_v44 = vsel %vm2654_vm4, %v231_v35, %v235_v18  ;;  %v246_v45 = vsel %vm2654_vm4, %v241_v36, %v245_v20  ;;  %v250_v50 = vrot.slane %v248_v41, 4  ;;  %v253_v51 = vrot.slane %v251_v42, 5  ;;  %v2707_v23 = vld [vmem:[%s2613_s28 + $0x20] sm:$0x1]  ;;  %v2714_v32 = vld [vmem:[%s2613_s28 + $0x48] sm:$0xf] }
  0x28   : > { %v1937_v48 = vcombine.low %v236_v44, %v246_v45  ;;  %v327_v49 = vrot.slane %v326_v39, 4  ;;  %v337_v53 = vrot.slane %v336_v46, 4  ;;  %v259_v54 = vrot.slane %v257_v43, 5  ;;  %v2727_v44 = vld [vmem:[%s2613_s28 + $0x4c] sm:$0xf]  ;;  %s1931_s4 = sshll.u32 %s175_s27, 7 }
  0x29   : > { %v263_v55 = vrot.slane %v261_v47, 4  ;;  %v267_v56 = vshll.u32 %v2662_v40, 16  ;;  %v747_v58 = vrot.slane %v2622_v6, 5  ;;  %v254_v60 = vor.u32 %v253_v51, %v250_v50  ;;  %s3302_s5 = scalar_lea.vmem [#allocation2], %s1931_s4  ;;  %s3381_s20 = scalar_lea.sflag [#allocation3], %s175_s27 }
  0x2a   : > { %2149 = vmatprep.mubr.msk.bf16.mxu0 %vm441_vm3, %v1937_v48  ;;  %v332_v59 = vsel %vm2654_vm4, %v327_v49, %v331_v33  ;;  %v751_v61 = vrot.slane %v2650_v29, 5  ;;  %v342_v63 = vsel %vm2654_vm4, %v337_v53, %v341_v38  ;;  %v344_v2 = vshrl.u32 %v2673_v52, 16  ;;  %v2722_v38 = vld [vmem:[%s3433_s1 + $0x8] sm:$0x3]  ;;  %s1848_s16 = sshll.u32 %s3302_s5, 4  ;;  %s3375_s16 = int_to_ptr.vmem [resolvable:$true] %s1848_s16 }
  0x2b   : > { %v264_v0 = vor.u32 %v263_v55, %v259_v54  ;;  %v269_v1 = vrot.slane %v267_v56, 5  ;;  %v2693_v7 = vcombine.low %v332_v59, %v342_v63  ;;  %v255_v8 = vrot.slane %v254_v60, 4  ;;  %v2741_v63 = vld [vmem:[%s2613_s28 + $0x24] sm:$0xf]  ;;  %s2405_s21 = scalar_lea.vmem %s3375_s16, 2048 }
  0x2c   : > { %v347_v9 = vshll.u32 %v2673_v52, 16  ;;  %v353_v10 = vshll.u32 %v2677_v57, 16  ;;  %v346_v16 = vrot.slane %v344_v2, 4  ;;  %v357_v17 = vshrl.u32 %v2677_v57, 16  ;;  %p2406_p13 = scmp.ne.s32.totalorder %s3375_s16, %s2405_s21 }
  0x2d   : > { %v265_v12 = vrot.slane %v264_v0, 4  ;;  %v363_v18 = vshll.u32 %v2685_v62, 16  ;;  %2157 = vmatprep.mubr.msk.bf16.mxu1 %vm441_vm3, %v2693_v7  ;;  %v260_v20 = vsel %vm2654_vm4, %v255_v8, %v259_v54  ;;  %v272_v24 = vshrl.u32 %v2691_v3, 16  ;;  %v2735_v54 = vld [vmem:[%s2613_s28 + $0x50] sm:$0x1] }
  0x2e   : > { %v349_v21 = vrot.slane %v347_v9, 5  ;;  %v355_v22 = vrot.slane %v353_v10, 5  ;;  %v359_v26 = vrot.slane %v357_v17, 4  ;;  %v275_v31 = vshll.u32 %v2691_v3, 16  ;;  %v2749_v8 = vld [vmem:[%s2613_s28 + $0x28] sm:$0xf]  ;;  %p2407_p0 = pnand %p2406_p13, %p2573_p3 }
  0x2f   : > { %v270_v25 = vsel %vm2654_vm4, %v265_v12, %v269_v1  ;;  %v365_v27 = vrot.slane %v363_v18, 5  ;;  %v274_v36 = vrot.slane %v272_v24, 4  ;;  %v281_v37 = vshll.u32 %v2700_v19, 16  ;;  %v2757_v17 = vld [vmem:[%s3433_s1 + $0x6] sm:$0x3] }
  0x30   : > { %v2716_v33 = vcombine.low %v260_v20, %v270_v25  ;;  %v350_v35 = vor.u32 %v349_v21, %v346_v16  ;;  %v360_v39 = vor.u32 %v359_v26, %v355_v22  ;;  %v277_v41 = vrot.slane %v275_v31, 5  ;;  %p2408_p1 = pneg %p2407_p0 }
  0x31   : > { %v285_v42 = vshrl.u32 %v2700_v19, 16  ;;  %v291_v43 = vshll.u32 %v2707_v23, 16  ;;  %v283_v46 = vrot.slane %v281_v37, 5  ;;  %v368_v47 = vshrl.u32 %v2714_v32, 16 }
  0x32   : > { %2150 = vmatmul.mubr.msk.bf16.vlgmr.msra.gmra.mxu0 %vm441_vm3, %v2716_v33  ;;  %v351_v45 = vrot.slane %v350_v35, 4  ;;  %v371_v48 = vshll.u32 %v2714_v32, 16  ;;  %v361_v49 = vrot.slane %v360_v39, 4  ;;  %v278_v50 = vor.u32 %v277_v41, %v274_v36  ;;  %v2770_v35 = vld [vmem:[%s2613_s28 + $0x54] sm:$0xf] }
  0x33   : > { %2184 = vmatpush3.bf16.msra.mxu0 %v2659_v34  ;;  %v287_v51 = vrot.slane %v285_v42, 4  ;;  %v293_v53 = vrot.slane %v291_v43, 5  ;;  %v370_v56 = vrot.slane %v368_v47, 4  ;;  %v377_v60 = vshll.u32 %v2727_v44, 16  ;;  %v2777_v42 = vld [vmem:[%s2613_s28 + $0x58] sm:$0xf] }
  0x34   : > { %v356_v55 = vsel %vm2654_vm4, %v351_v45, %v355_v22  ;;  %v373_v59 = vrot.slane %v371_v48, 5  ;;  %2316 = vmatprep.subr.msk.bf16.mxu0 %vm466_vm0, %v2722_v38  ;;  %v366_v34 = vsel %vm2654_vm4, %v361_v49, %v365_v27  ;;  %v279_v0 = vrot.slane %v278_v50, 4  ;;  %v2762_v22 = vld [vmem:[%s2613_s28 + $0x2c] sm:$0x1] }
  0x35   : > { %v288_v1 = vor.u32 %v287_v51, %v283_v46  ;;  %v381_v2 = vshrl.u32 %v2727_v44, 16  ;;  %v2751_v9 = vcombine.low %v356_v55, %v366_v34  ;;  %v379_v12 = vrot.slane %v377_v60, 5 }
  0x36   : > { %v374_v10 = vor.u32 %v373_v59, %v370_v56  ;;  %v387_v16 = vshll.u32 %v2735_v54, 16  ;;  %v284_v18 = vsel %vm2654_vm4, %v279_v0, %v283_v46  ;;  %v296_v24 = vshrl.u32 %v2741_v63, 16 }
  0x37   : > { %v289_v20 = vrot.slane %v288_v1, 4  ;;  %v383_v21 = vrot.slane %v381_v2, 4  ;;  %2158 = vmatmul.mubr.msk.bf16.vlgmr.msra.gmra.mxu1 %vm441_vm3, %v2751_v9  ;;  %v299_v27 = vshll.u32 %v2741_v63, 16  ;;  %v305_v31 = vshll.u32 %v2749_v8, 16 }
  0x38   : > { %v375_v25 = vrot.slane %v374_v10, 4  ;;  %v389_v26 = vrot.slane %v387_v16, 5  ;;  %2166 = vmatpush3.bf16.msra.mxu1 %v2639_v15  ;;  %v298_v39 = vrot.slane %v296_v24, 4  ;;  %v309_v41 = vshrl.u32 %v2749_v8, 16  ;;  %v2046_v24 = vld [vmem:[%s3433_s1 + $0x10] sm:$0x3] }
  0x39   : > { %v294_v36 = vsel %vm2654_vm4, %v289_v20, %v293_v53  ;;  %v384_v37 = vor.u32 %v383_v21, %v379_v12  ;;  %v301_v46 = vrot.slane %v299_v27, 5  ;;  %v307_v47 = vrot.slane %v305_v31, 5  ;;  %2315 = vmatprep.subr.msk.bf16.mxu1 %vm466_vm0, %v2757_v17  ;;  %v2790_v53 = vld [vmem:[%s2613_s28 + $0x5c] sm:$0x1] }
  0x3a   : > { %v2779_v43 = vcombine.low %v284_v18, %v294_v36  ;;  %v380_v45 = vsel %vm2654_vm4, %v375_v25, %v379_v12  ;;  %v311_v48 = vrot.slane %v309_v41, 4  ;;  %v315_v49 = vshll.u32 %v2762_v22, 16 }
  0x3b   : > { %v385_v15 = vrot.slane %v384_v37, 4  ;;  %v392_v50 = vshrl.u32 %v2770_v35, 16  ;;  %v302_v51 = vor.u32 %v301_v46, %v298_v39  ;;  %v395_v55 = vshll.u32 %v2770_v35, 16 }
  0x3c   : > { %2153 = vmatprep.mubr.msk.bf16.mxu0 %vm441_vm3, %v2779_v43  ;;  %v401_v56 = vshll.u32 %v2777_v42, 16  ;;  %v405_v59 = vshrl.u32 %v2777_v42, 16  ;;  %v312_v34 = vor.u32 %v311_v48, %v307_v47  ;;  %v317_v0 = vrot.slane %v315_v49, 5 }
  0x3d   : > { %v390_v60 = vsel %vm2654_vm4, %v385_v15, %v389_v26  ;;  %v394_v1 = vrot.slane %v392_v50, 4  ;;  %v303_v10 = vrot.slane %v302_v51, 4  ;;  %v397_v12 = vrot.slane %v395_v55, 5 }
  0x3e   : > { %v2797_v2 = vcombine.low %v380_v45, %v390_v60  ;;  %v403_v16 = vrot.slane %v401_v56, 5  ;;  %v313_v18 = vrot.slane %v312_v34, 4  ;;  %v407_v20 = vrot.slane %v405_v59, 4 }
  0x3f   : > { %v411_v21 = vshll.u32 %v2790_v53, 16  ;;  %v1969_v25 = vrot.slane %v2616_v4, 9  ;;  %v754_v26 = vrot.slane %v2662_v40, 5  ;;  %v308_v27 = vsel %vm2654_vm4, %v303_v10, %v307_v47 }
  0x40   : > { %2161 = vmatprep.mubr.msk.bf16.mxu1 %vm441_vm3, %v2797_v2  ;;  %v398_v31 = vor.u32 %v397_v12, %v394_v1  ;;  %v744_v36 = vrot.slane %v2619_v5, 5  ;;  %v318_v37 = vsel %vm2654_vm4, %v313_v18, %v317_v0  ;;  %v408_v39 = vor.u32 %v407_v20, %v403_v16 }
  0x41   : > { %v413_v41 = vrot.slane %v411_v21, 5  ;;  %v1970_v45 = vrot.slane %v2647_v28, 9  ;;  %v2816_v46 = vcombine.low %v308_v27, %v318_v37  ;;  %v1953_v47 = vcombine.low %v2616_v4, %v2619_v5 }
  0x42   : > { %v399_v15 = vrot.slane %v398_v31, 4  ;;  %v745_v40 = vsel %vm2802_vm7, %v1969_v25, %v744_v36  ;;  %v746_v48 = vrot.slane %v744_v36, 4  ;;  %v409_v49 = vrot.slane %v408_v39, 4 }
  0x43   : > { %v752_v50 = vsel %vm2802_vm7, %v1970_v45, %v751_v61  ;;  %v753_v51 = vrot.slane %v751_v61, 4  ;;  %2154 = vmatmul.mubr.msk.bf16.gmra.mxu0 %vm441_vm3, %v2816_v46  ;;  %v1971_v4 = vrot.slane %v2691_v3, 9  ;;  %v758_v5 = vrot.slane %v2700_v19, 5 }
  0x44   : > { %v404_v55 = vsel %vm2654_vm4, %v399_v15, %v403_v16  ;;  %v748_v56 = vsel %vm2802_vm7, %v746_v48, %v747_v58  ;;  %v414_v59 = vsel %vm2654_vm4, %v409_v49, %v413_v41  ;;  %v761_v34 = vrot.slane %v2707_v23, 5 }
  0x45   : > { %v1978_v60 = vcombine.low %v745_v40, %v748_v56  ;;  %v755_v61 = vsel %vm2802_vm7, %v753_v51, %v754_v26  ;;  %v2843_v0 = vcombine.low %v404_v55, %v414_v59  ;;  %v759_v6 = vsel %vm2802_vm7, %v1971_v4, %v758_v5 }
  0x46   : > { %v760_v1 = vrot.slane %v758_v5, 4  ;;  %v775_v58 = vrot.slane %v2636_v14, 5  ;;  %v1972_v10 = vrot.slane %v2741_v63, 9  ;;  %v765_v12 = vrot.slane %v2749_v8, 5 }
  0x47   : > { %2185 = vmatprep.mubr.msk.bf16.mxu0 %vm441_vm3, %v1978_v60  ;;  %v768_v16 = vrot.slane %v2762_v22, 5  ;;  %2162 = vmatmul.mubr.msk.bf16.gmra.mxu1 %vm441_vm3, %v2843_v0  ;;  %v2854_v23 = vcombine.low %v752_v50, %v755_v61  ;;  %v1973_v20 = vrot.slane %v2629_v11, 9  ;;  %v772_v14 = vrot.slane %v2633_v13, 5 }
  0x48   : > { %v762_v18 = vsel %vm2802_vm7, %v760_v1, %v761_v34  ;;  %2167 = vmatprep.mubr.msk.bf16.mxu1 %vm441_vm3, %v1953_v47  ;;  %v767_v25 = vrot.slane %v765_v12, 4  ;;  %v1123_v22 = vsel %vm466_vm0, %v2722_v38, 0  ;;  %v1974_v27 = vrot.slane %v2673_v52, 9  ;;  %v2879_v38 = vld [vmem:[%s3433_s1 + $0xc] sm:$0x3] }
  0x49   : > { %v2861_v21 = vcombine.low %v759_v6, %v762_v18  ;;  %v774_v26 = vrot.slane %v772_v14, 4  ;;  %v779_v31 = vrot.slane %v2677_v57, 5  ;;  %v2869_v36 = vcombine.low %v2647_v28, %v2650_v29  ;;  %v2899_v47 = vld [vmem:[%s2613_s28 + $0x60] sm:$0xf] }
  0x4a   : > { %v766_v37 = vsel %vm2802_vm7, %v1972_v10, %v765_v12  ;;  %v769_v39 = vsel %vm2802_vm7, %v767_v25, %v768_v16  ;;  %v782_v41 = vrot.slane %v2685_v62, 5  ;;  %v773_v28 = vsel %vm2802_vm7, %v1973_v20, %v772_v14  ;;  %v2952_v25 = vld [vmem:[%s2613_s28 + $0x6c] sm:$0xf] }
  0x4b   : > { %2186 = vmatmul.mubr.msk.bf16.vlgmr.msra.gmra.mxu0 %vm441_vm3, %v2854_v23  ;;  %v776_v29 = vsel %vm2802_vm7, %v774_v26, %v775_v58  ;;  %v781_v45 = vrot.slane %v779_v31, 4  ;;  %v1975_v15 = vrot.slane %v2714_v32, 9  ;;  %v975_v62 = vsel %vm466_vm0, %v2757_v17, 0 }
  0x4c   : > { %2220 = vmatpush3.bf16.msra.mxu0 %v1123_v22  ;;  %v2892_v40 = vcombine.low %v2691_v3, %v2700_v19  ;;  %2189 = vmatprep.mubr.msk.bf16.mxu0 %vm441_vm3, %v2861_v21  ;;  %v786_v48 = vrot.slane %v2727_v44, 5  ;;  %v789_v49 = vrot.slane %v2735_v54, 5  ;;  %v2903_v50 = vcombine.low %v2741_v63, %v2749_v8  ;;  %v2916_v19 = vld [vmem:[%s2613_s28 + $0x64] sm:$0xf]  ;;  %v215_v54 = vld [vmem:[%s2613_s28 + $0x68] sm:$0x1] }
  0x4d   : > { %v2905_v51 = vcombine.low %v766_v37, %v769_v39  ;;  %v2909_v17 = vcombine.low %v2629_v11, %v2633_v13  ;;  %v780_v3 = vsel %vm2802_vm7, %v1974_v27, %v779_v31  ;;  %2318 = vmatprep.subr.msk.bf16.mxu0 %vm466_vm0, %v2879_v38  ;;  %v2919_v55 = vcombine.low %v773_v28, %v776_v29  ;;  %v2927_v11 = vld [vmem:[%s3433_s1 + $0xa] sm:$0x3]  ;;  %v2959_v31 = vld [vmem:[%s2613_s28 + $0x70] sm:$0xf]  ;;  %v218_v29 = vld [vmem:[%s2613_s28 + $0x74] sm:$0x1] }
  0x4e   : > { %v783_v63 = vsel %vm2802_vm7, %v781_v45, %v782_v41  ;;  %v788_v8 = vrot.slane %v786_v48, 4  ;;  %v793_v56 = vrot.slane %v2777_v42, 5  ;;  %v787_v13 = vsel %vm2802_vm7, %v1975_v15, %v786_v48  ;;  %s2409_s28 = sshll.u32 %s2499_s24, 4  ;;  %s2410_s28 = int_to_ptr.vmem [resolvable:$false] %s2409_s28 }
  0x4f   : > { %2168 = vmatmul.mubr.msk.bf16.vlgmr.msra.gmra.mxu1 %vm441_vm3, %v2869_v36  ;;  %v1976_v4 = vrot.slane %v2770_v35, 9  ;;  %v1091_v5 = vshrl.u32 %v2899_v47, 16  ;;  %v1094_v59 = vshll.u32 %v2899_v47, 16  ;;  %v1104_v61 = vshrl.u32 %v2916_v19, 16  ;;  %s2411_s29 = scalar_lea.vmem %s2410_s28, 4096  ;;  %p2412_p2 = scmp.lt.s32.totalorder %s3375_s16, %s2410_s28 }
  0x50   : > { %2202 = vmatpush3.bf16.msra.mxu1 %v975_v62  ;;  %2171 = vmatprep.mubr.msk.bf16.mxu1 %vm441_vm3, %v2892_v40  ;;  %v790_v60 = vsel %vm2802_vm7, %v788_v8, %v789_v49  ;;  %v1100_v34 = vshll.u32 %v2916_v19, 16  ;;  %v1110_v6 = vshll.u32 %v215_v54, 16  ;;  %v2942_v1 = vcombine.low %v780_v3, %v783_v63  ;;  %p2413_p4 = scmp.lt.s32.totalorder %s2411_s29, %s2405_s21 }
  0x51   : > { %v796_v58 = vrot.slane %v2790_v53, 5  ;;  %2317 = vmatprep.subr.msk.bf16.mxu1 %vm466_vm0, %v2927_v11  ;;  %v1093_v10 = vrot.slane %v1091_v5, 4  ;;  %v1096_v12 = vrot.slane %v1094_v59, 5  ;;  %v2947_v16 = vcombine.low %v787_v13, %v790_v60 }
  0x52   : > { %v795_v18 = vrot.slane %v793_v56, 4  ;;  %v1102_v20 = vrot.slane %v1100_v34, 5  ;;  %v1106_v14 = vrot.slane %v1104_v61, 4  ;;  %v2014_v53 = vrot.slane %v2899_v47, 9  ;;  %p2414_p5 = por %p2413_p4, %p2412_p2 }
  0x53   : > { %2190 = vmatmul.mubr.msk.bf16.gmra.mxu0 %vm441_vm3, %v2905_v51  ;;  %v1097_v22 = vor.u32 %v1096_v12, %v1093_v10  ;;  %v1241_v26 = vrot.slane %v2916_v19, 5  ;;  %v1244_v27 = vrot.slane %v215_v54, 5  ;;  %v1112_v39 = vrot.slane %v1110_v6, 5 }
  0x54   : > { %2193 = vmatprep.mubr.msk.bf16.mxu0 %vm441_vm3, %v2919_v55  ;;  %v1107_v37 = vor.u32 %v1106_v14, %v1102_v20  ;;  %v1497_v41 = vshrl.u32 %v2952_v25, 16  ;;  %v1500_v28 = vshll.u32 %v2952_v25, 16  ;;  %v1510_v48 = vshrl.u32 %v2959_v31, 16  ;;  %p2415_p6 = pnand %p2414_p5, %p2408_p1 }
  0x55   : > { %v1098_v45 = vrot.slane %v1097_v22, 4  ;;  %v1242_v15 = vsel %vm2802_vm7, %v2014_v53, %v1241_v26  ;;  %v1243_v62 = vrot.slane %v1241_v26, 4  ;;  %v1506_v63 = vshll.u32 %v2959_v31, 16 }
  0x56   : > { %v1108_v49 = vrot.slane %v1107_v37, 4  ;;  %v1499_v3 = vrot.slane %v1497_v41, 4  ;;  %v1502_v54 = vrot.slane %v1500_v28, 5  ;;  %v1512_v5 = vrot.slane %v1510_v48, 4 }
  0x57   : > { %2172 = vmatmul.mubr.msk.bf16.gmra.mxu1 %vm441_vm3, %v2903_v50  ;;  %v1103_v8 = vsel %vm2654_vm4, %v1098_v45, %v1102_v20  ;;  %v1245_v13 = vsel %vm2802_vm7, %v1243_v62, %v1244_v27  ;;  %v1516_v59 = vshll.u32 %v218_v29, 16  ;;  %v1508_v6 = vrot.slane %v1506_v63, 5 }
  0x58   : > { %2175 = vmatprep.mubr.msk.bf16.mxu1 %vm441_vm3, %v2909_v17  ;;  %v1113_v60 = vsel %vm2654_vm4, %v1108_v49, %v1112_v39  ;;  %v2980_v61 = vcombine.low %v1242_v15, %v1245_v13  ;;  %v1503_v34 = vor.u32 %v1502_v54, %v1499_v3  ;;  %v2045_v12 = vrot.slane %v2952_v25, 9 }
  0x59   : > { %v2982_v10 = vcombine.low %v1103_v8, %v1113_v60  ;;  %v1647_v20 = vrot.slane %v2959_v31, 5  ;;  %v1513_v22 = vor.u32 %v1512_v5, %v1508_v6  ;;  %v1518_v53 = vrot.slane %v1516_v59, 5 }
  0x5a   : > { %v1504_v14 = vrot.slane %v1503_v34, 4  ;;  %v1650_v26 = vrot.slane %v218_v29, 5  ;;  %v1958_v27 = vcombine.low %v2673_v52, %v2677_v57  ;;  %v1959_v37 = vcombine.low %v2714_v32, %v2727_v44 }
  0x5b   : > { %2194 = vmatmul.mubr.msk.bf16.gmra.mxu0 %vm441_vm3, %v2942_v1  ;;  %v2994_v39 = vsel %vm2802_vm7, %v2045_v12, %v1647_v20  ;;  %v1649_v41 = vrot.slane %v1647_v20, 4  ;;  %v794_v52 = vsel %vm2802_vm7, %v1976_v4, %v793_v56  ;;  %v797_v57 = vsel %vm2802_vm7, %v795_v18, %v796_v58 }
  0x5c   : > { %2197 = vmatprep.mubr.msk.bf16.mxu0 %vm441_vm3, %v2947_v16  ;;  %v1509_v32 = vsel %vm2654_vm4, %v1504_v14, %v1508_v6  ;;  %v1514_v44 = vrot.slane %v1513_v22, 4  ;;  %v1985_v56 = vcombine.low %v794_v52, %v797_v57  ;;  %v1960_v58 = vcombine.low %v2770_v35, %v2777_v42  ;;  %v2035_v35 = vld [vmem:[%s3433_s1 + $0xe] sm:$0x3] }
  0x5d   : > { %v3010_v28 = vsel %vm2802_vm7, %v1649_v41, %v1650_v26  ;;  %v1381_v30 = vsel %vm466_vm0, %v2879_v38, 0  ;;  %v1995_v42 = vcombine.low %v2899_v47, %v2916_v19  ;;  %v1529_v38 = vsel %vm466_vm0, %v2035_v35, 0 }
  0x5e   : > { %v1519_v29 = vsel %vm2654_vm4, %v1514_v44, %v1518_v53  ;;  %v2047_v45 = vcombine.low %v2994_v39, %v3010_v28 }
  0x5f   : > { %2176 = vmatmul.mubr.msk.bf16.gmra.mxu1 %vm441_vm3, %v1958_v27  ;;  %v3017_v4 = vcombine.low %v1509_v32, %v1519_v29 }
  0x60   : > { %2179 = vmatprep.mubr.msk.bf16.mxu1 %vm441_vm3, %v1959_v37 }
  0x63   : > { %2198 = vmatmul.mubr.msk.bf16.gmra.mxu0 %vm441_vm3, %v1985_v56 }
  0x64   : > { %2221 = vmatprep.mubr.msk.bf16.mxu0 %vm441_vm3, %v2716_v33  ;;  %v1255_v33 = vsel %vm466_vm0, %v2927_v11, 0 }
  0x67   : > { %2180 = vmatmul.mubr.msk.bf16.gmra.mxu1 %vm441_vm3, %v1960_v58 }
  0x68   : > { %2203 = vmatprep.mubr.msk.bf16.mxu1 %vm441_vm3, %v2869_v36  ;;  %v1661_v36 = vsel %vm466_vm0, %v2046_v24, 0 }
  0x6b   : > { %2222 = vmatmul.mubr.msk.bf16.vlgmr.msra.gmra.mxu0 %vm441_vm3, %v2779_v43 }
  0x6c   : > { %2256 = vmatpush3.bf16.msra.mxu0 %v1381_v30  ;;  %2225 = vmatprep.mubr.msk.bf16.mxu0 %vm441_vm3, %v2816_v46 }
  0x6d   : > { %2320 = vmatprep.subr.msk.bf16.mxu0 %vm466_vm0, %v2046_v24 }
  0x6f   : > { %2204 = vmatmul.mubr.msk.bf16.vlgmr.msra.gmra.mxu1 %vm441_vm3, %v2892_v40 }
  0x70   : > { %2238 = vmatpush3.bf16.msra.mxu1 %v1255_v33  ;;  %2207 = vmatprep.mubr.msk.bf16.mxu1 %vm441_vm3, %v2903_v50 }
  0x71   : > { %2319 = vmatprep.subr.msk.bf16.mxu1 %vm466_vm0, %v2035_v35 }
  0x73   : > { %2226 = vmatmul.mubr.msk.bf16.gmra.mxu0 %vm441_vm3, %v2693_v7 }
  0x74   : > { %2229 = vmatprep.mubr.msk.bf16.mxu0 %vm441_vm3, %v2751_v9 }
  0x77   : > { %2208 = vmatmul.mubr.msk.bf16.gmra.mxu1 %vm441_vm3, %v2909_v17 }
  0x78   : > { %2211 = vmatprep.mubr.msk.bf16.mxu1 %vm441_vm3, %v1958_v27 }
  0x7b   : > { %2230 = vmatmul.mubr.msk.bf16.gmra.mxu0 %vm441_vm3, %v2797_v2 }
  0x7c   : > { %2233 = vmatprep.mubr.msk.bf16.mxu0 %vm441_vm3, %v2843_v0 }
  0x7f   : > { %2212 = vmatmul.mubr.msk.bf16.gmra.mxu1 %vm441_vm3, %v1959_v37 }
  0x80   : > { %2215 = vmatprep.mubr.msk.bf16.mxu1 %vm441_vm3, %v1960_v58 }
  0x83   : > { %2234 = vmatmul.mubr.msk.bf16.gmra.mxu0 %vm441_vm3, %v2982_v10 }
  0x84   : > { %2257 = vmatprep.mubr.msk.bf16.mxu0 %vm441_vm3, %v2892_v40 }
  0x87   : > { %2216 = vmatmul.mubr.msk.bf16.gmra.mxu1 %vm441_vm3, %v1995_v42 }
  0x88   : > { %2239 = vmatprep.mubr.msk.bf16.mxu1 %vm441_vm3, %v2854_v23  ;;  %v2026_v23 = vcombine.low %v2952_v25, %v2959_v31 }
  0x8b   : > { %2258 = vmatmul.mubr.msk.bf16.vlgmr.msra.gmra.mxu0 %vm441_vm3, %v2903_v50 }
  0x8c   : > { %2292 = vmatpush3.bf16.msra.mxu0 %v1661_v36  ;;  %2261 = vmatprep.mubr.msk.bf16.mxu0 %vm441_vm3, %v2909_v17 }
  0x8f   : > { %2240 = vmatmul.mubr.msk.bf16.vlgmr.msra.gmra.mxu1 %vm441_vm3, %v2861_v21 }
  0x90   : > { %2274 = vmatpush3.bf16.msra.mxu1 %v1529_v38  ;;  %2243 = vmatprep.mubr.msk.bf16.mxu1 %vm441_vm3, %v2905_v51 }
  0x93   : > { %2262 = vmatmul.mubr.msk.bf16.gmra.mxu0 %vm441_vm3, %v1958_v27 }
  0x94   : > { %2265 = vmatprep.mubr.msk.bf16.mxu0 %vm441_vm3, %v1959_v37 }
  0x97   : > { %2244 = vmatmul.mubr.msk.bf16.gmra.mxu1 %vm441_vm3, %v2919_v55 }
  0x98   : > { %2247 = vmatprep.mubr.msk.bf16.mxu1 %vm441_vm3, %v2942_v1 }
  0x9b   : > { %2266 = vmatmul.mubr.msk.bf16.gmra.mxu0 %vm441_vm3, %v1960_v58 }
  0x9c   : > { %2269 = vmatprep.mubr.msk.bf16.mxu0 %vm441_vm3, %v1995_v42 }
  0x9f   : > { %2248 = vmatmul.mubr.msk.bf16.gmra.mxu1 %vm441_vm3, %v2947_v16 }
  0xa0   : > { %2251 = vmatprep.mubr.msk.bf16.mxu1 %vm441_vm3, %v1985_v56 }
  0xa3   : > { %2270 = vmatmul.mubr.msk.bf16.gmra.mxu0 %vm441_vm3, %v2026_v23 }
  0xa4   : > { %2293 = vmatprep.mubr.msk.bf16.mxu0 %vm441_vm3, %v2861_v21 }
  0xa7   : > { %2252 = vmatmul.mubr.msk.bf16.gmra.mxu1 %vm441_vm3, %v2980_v61 }
  0xa8   : > { %2275 = vmatprep.mubr.msk.bf16.mxu1 %vm441_vm3, %v2779_v43 }
  0xab   : > { %2294 = vmatmul.mubr.msk.bf16.vlgmr.msra.gmra.mxu0 %vm441_vm3, %v2905_v51 }
  0xac   : > { %2297 = vmatprep.mubr.msk.bf16.mxu0 %vm441_vm3, %v2919_v55 }
  0xaf   : > { %2276 = vmatmul.mubr.msk.bf16.vlgmr.msra.gmra.mxu1 %vm441_vm3, %v2816_v46 }
  0xb0   : > { %2279 = vmatprep.mubr.msk.bf16.mxu1 %vm441_vm3, %v2693_v7 }
  0xb3   : > { %2298 = vmatmul.mubr.msk.bf16.gmra.mxu0 %vm441_vm3, %v2942_v1 }
  0xb4   : > { %2301 = vmatprep.mubr.msk.bf16.mxu0 %vm441_vm3, %v2947_v16 }
  0xb7   : > { %2280 = vmatmul.mubr.msk.bf16.gmra.mxu1 %vm441_vm3, %v2751_v9 }
  0xb8   : > { %2283 = vmatprep.mubr.msk.bf16.mxu1 %vm441_vm3, %v2797_v2 }
  0xbb   : > { %2302 = vmatmul.mubr.msk.bf16.gmra.mxu0 %vm441_vm3, %v1985_v56 }
  0xbc   : > { %2305 = vmatprep.mubr.msk.bf16.mxu0 %vm441_vm3, %v2980_v61 }
  0xbf   : > { %2284 = vmatmul.mubr.msk.bf16.gmra.mxu1 %vm441_vm3, %v2843_v0 }
  0xc0   : > { %2287 = vmatprep.mubr.msk.bf16.mxu1 %vm441_vm3, %v2982_v10 }
  0xc3   : > { %2306 = vmatmul.mubr.msk.bf16.gmra.mxu0 %vm441_vm3, %v2047_v45 }
  0xc7   : > { %2288 = vmatmul.mubr.msk.bf16.gmra.mxu1 %vm441_vm3, %v3017_v4 }
  0xf2   : > { %v2151_v7 = vpop.f32.mrf.mxu0 }
  0xf4   : > { %v504_v43 = vpop.f32.mrf.mxu0 }
  0xf6   : > { %v2152_v46 = vpop.f32.mrf.mxu0 }
  0xf7   : > { %v2159_v9 = vpop.f32.mrf.mxu1 }
  0xf8   : > { %v507_v40 = vpop.f32.mrf.mxu0 }
  0xf9   : > { %v536_v2 = vpop.f32.mrf.mxu1 }
  0xfb   : > { %v2160_v21 = vpop.f32.mrf.mxu1 }
  0xfd   : > { %v539_v47 = vpop.f32.mrf.mxu1 }
 0x103   : > { %v2155_v0 = vpop.f32.mrf.mxu0 }
 0x105   : > { %v520_v50 = vpop.f32.mrf.mxu0 }
 0x107   : > { %v2163_v51 = vpop.f32.mrf.mxu1  ;;  %v2156_v17 = vpop.f32.mrf.mxu0 }
 0x109   : > { %v552_v19 = vpop.f32.mrf.mxu1  ;;  %v523_v55 = vpop.f32.mrf.mxu0 }
 0x10b   : > { %v2164_v11 = vpop.f32.mrf.mxu1  ;;  %v2187_v1 = vpop.f32.mrf.mxu0 }
 0x10d   : > { %v3129_v16 = vpop.f32.mrf.mxu1  ;;  %v885_v18 = vpop.f32.mrf.mxu0 }
 0x10f   : > { %v2169_v25 = vpop.f32.mrf.mxu1  ;;  %v2188_v31 = vpop.f32.mrf.mxu0 }
 0x110   : > { %v677_v15 = vadd.f32 %v2169_v25, %v2151_v7 }
 0x111   : > { %v668_v62 = vpop.f32.mrf.mxu1  ;;  %v888_v48 = vpop.f32.mrf.mxu0 }
 0x112   : > { %v3131_v49 = vadd.f32 %v2187_v1, %v677_v15  ;;  %v669_v3 = vadd.f32 %v668_v62, %v504_v43 }
 0x113   : > { %v2170_v54 = vpop.f32.mrf.mxu1  ;;  %v2191_v63 = vpop.f32.mrf.mxu0 }
 0x114   : > { %v3133_v8 = vadd.f32 %v885_v18, %v669_v3  ;;  %v680_v13 = vadd.f32 %v2170_v54, %v2152_v46 }
 0x115   : > { %v671_v5 = vpop.f32.mrf.mxu1  ;;  %v901_v59 = vpop.f32.mrf.mxu0 }
 0x116   : > { %v3135_v60 = vadd.f32 %v2188_v31, %v680_v13  ;;  %v672_v61 = vadd.f32 %v671_v5, %v507_v40 }
 0x117   : > { %v2173_v34 = vpop.f32.mrf.mxu1  ;;  %v2192_v6 = vpop.f32.mrf.mxu0 }
 0x118   : > { %v3137_v10 = vadd.f32 %v888_v48, %v672_v61  ;;  %v693_v12 = vadd.f32 %v2173_v34, %v2155_v0 }
 0x119   : > { %v684_v20 = vpop.f32.mrf.mxu1  ;;  %v904_v14 = vpop.f32.mrf.mxu0 }
 0x11a   : > { %v3139_v22 = vadd.f32 %v2191_v63, %v693_v12  ;;  %v685_v53 = vadd.f32 %v684_v20, %v520_v50 }
 0x11b   : > { %v2174_v26 = vpop.f32.mrf.mxu1  ;;  %v2195_v27 = vpop.f32.mrf.mxu0 }
 0x11c   : > { %v3141_v37 = vadd.f32 %v901_v59, %v685_v53  ;;  %v696_v39 = vadd.f32 %v2174_v26, %v2156_v17 }
 0x11d   : > { %v687_v41 = vpop.f32.mrf.mxu1  ;;  %v917_v52 = vpop.f32.mrf.mxu0 }
 0x11e   : > { %v3143_v57 = vadd.f32 %v2192_v6, %v696_v39  ;;  %v688_v32 = vadd.f32 %v687_v41, %v523_v55 }
 0x11f   : > { %v2177_v44 = vpop.f32.mrf.mxu1  ;;  %v2196_v28 = vpop.f32.mrf.mxu0 }
 0x120   : > { %v3145_v29 = vadd.f32 %v904_v14, %v688_v32  ;;  %v709_v45 = vadd.f32 %v2177_v44, %v2159_v9 }
 0x121   : > { %v700_v56 = vpop.f32.mrf.mxu1  ;;  %v920_v4 = vpop.f32.mrf.mxu0 }
 0x122   : > { %v3147_v58 = vadd.f32 %v2195_v27, %v709_v45  ;;  %v701_v30 = vadd.f32 %v700_v56, %v536_v2 }
 0x123   : > { %v2178_v24 = vpop.f32.mrf.mxu1  ;;  %v2199_v33 = vpop.f32.mrf.mxu0 }
 0x124   : > { %v3149_v35 = vadd.f32 %v917_v52, %v701_v30  ;;  %v712_v42 = vadd.f32 %v2178_v24, %v2160_v21 }
 0x125   : > { %v703_v36 = vpop.f32.mrf.mxu1  ;;  %v933_v38 = vpop.f32.mrf.mxu0 }
 0x126   : > { %v3151_v23 = vadd.f32 %v2196_v28, %v712_v42  ;;  %v704_v7 = vadd.f32 %v703_v36, %v539_v47 }
 0x127   : > { %v2181_v43 = vpop.f32.mrf.mxu1  ;;  %v2200_v46 = vpop.f32.mrf.mxu0 }
 0x128   : > { %v3153_v40 = vadd.f32 %v920_v4, %v704_v7  ;;  %v725_v9 = vadd.f32 %v2181_v43, %v2163_v51 }
 0x129   : > { %v716_v0 = vpop.f32.mrf.mxu1  ;;  %v936_v50 = vpop.f32.mrf.mxu0 }
 0x12a   : > { %v3155_v17 = vadd.f32 %v2199_v33, %v725_v9  ;;  %v717_v2 = vadd.f32 %v716_v0, %v552_v19 }
 0x12b   : > { %v2182_v55 = vpop.f32.mrf.mxu1  ;;  %v3157_v1 = vpop.f32.mrf.mxu0 }
 0x12c   : > { %v3159_v18 = vadd.f32 %v933_v38, %v717_v2  ;;  %v728_v21 = vadd.f32 %v2182_v55, %v2164_v11 }
 0x12d   : > { %v719_v25 = vpop.f32.mrf.mxu1  ;;  %v3161_v31 = vpop.f32.mrf.mxu0 }
 0x12e   : > { %3442 = vst [vmem:[#allocation5_spill] sm:$0xff] %v3159_v18  ;;  %v3163_v47 = vadd.f32 %v2200_v46, %v728_v21  ;;  %v720_v15 = vadd.f32 %v719_v25, %v3129_v16 }
 0x12f   : > { %v2205_v62 = vpop.f32.mrf.mxu1  ;;  %v3166_v51 = vpop.f32.mrf.mxu0 }
 0x130   : > { %3443 = vst [vmem:[#allocation6_spill] sm:$0xff] %v3163_v47  ;;  %v3168_v48 = vadd.f32 %v936_v50, %v720_v15 }
 0x131   : > { %v1011_v3 = vpop.f32.mrf.mxu1  ;;  %v3170_v19 = vpop.f32.mrf.mxu0 }
 0x132   : > { %3444 = vst [vmem:[#allocation7_spill] sm:$0xff] %v3168_v48 }
 0x133   : > { %v2206_v54 = vpop.f32.mrf.mxu1  ;;  %v3172_v63 = vpop.f32.mrf.mxu0 }
 0x135   : > { %v1014_v13 = vpop.f32.mrf.mxu1  ;;  %v3174_v11 = vpop.f32.mrf.mxu0 }
 0x137   : > { %v2209_v5 = vpop.f32.mrf.mxu1  ;;  %v3176_v59 = vpop.f32.mrf.mxu0 }
 0x139   : > { %v1027_v61 = vpop.f32.mrf.mxu1  ;;  %v3178_v34 = vpop.f32.mrf.mxu0 }
 0x13b   : > { %v3180_v16 = vpop.f32.mrf.mxu1  ;;  %v3182_v6 = vpop.f32.mrf.mxu0 }
 0x13d   : > { %v3184_v12 = vpop.f32.mrf.mxu1  ;;  %v3186_v20 = vpop.f32.mrf.mxu0 }
 0x13f   : > { %v3188_v14 = vpop.f32.mrf.mxu1  ;;  %v3190_v53 = vpop.f32.mrf.mxu0 }
 0x141   : > { %v3192_v26 = vpop.f32.mrf.mxu1  ;;  %v3194_v27 = vpop.f32.mrf.mxu0 }
 0x142   : > { %3445 = vst [vmem:[#allocation8_spill] sm:$0xff] %v3194_v27 }
 0x143   : > { %v3196_v39 = vpop.f32.mrf.mxu1  ;;  %v3198_v41 = vpop.f32.mrf.mxu0 }
 0x144   : > { %3446 = vst [vmem:[#allocation9_spill] sm:$0xff] %v3198_v41 }
 0x145   : > { %v3200_v52 = vpop.f32.mrf.mxu1  ;;  %v3202_v32 = vpop.f32.mrf.mxu0 }
 0x146   : > { %3447 = vst [vmem:[#allocation10_spill] sm:$0xff] %v3202_v32 }
 0x147   : > { %v3204_v44 = vpop.f32.mrf.mxu1  ;;  %v3206_v28 = vpop.f32.mrf.mxu0 }
 0x148   : > { %3448 = vst [vmem:[#allocation11_spill] sm:$0xff] %v3206_v28 }
 0x149   : > { %v3208_v45 = vpop.f32.mrf.mxu1  ;;  %v3210_v56 = vpop.f32.mrf.mxu0 }
 0x14a   : > { %3449 = vst [vmem:[#allocation12_spill] sm:$0xff] %v3208_v45  ;;  %3450 = vst [vmem:[#allocation13_spill] sm:$0xff] %v3210_v56  ;;  %v1076_v45 = vadd.f32 %v2205_v62, %v3131_v49  ;;  %v1075_v62 = vadd.f32 %v1014_v13, %v3137_v10 }
 0x14b   : > { %v3212_v4 = vpop.f32.mrf.mxu1  ;;  %v2259_v30 = vpop.f32.mrf.mxu0 }
 0x14c   : > { %3451 = vst [vmem:[#allocation14_spill] sm:$0xff] %v3212_v4 }
 0x14d   : > { %v3214_v24 = vpop.f32.mrf.mxu1  ;;  %v1417_v33 = vpop.f32.mrf.mxu0 }
 0x14e   : > { %3452 = vst [vmem:[#allocation15_spill] sm:$0xff] %v3214_v24 }
 0x14f   : > { %v2241_v42 = vpop.f32.mrf.mxu1  ;;  %v2260_v36 = vpop.f32.mrf.mxu0 }
 0x151   : > { %v1291_v38 = vpop.f32.mrf.mxu1  ;;  %v3216_v7 = vpop.f32.mrf.mxu0 }
 0x153   : > { %v2242_v43 = vpop.f32.mrf.mxu1  ;;  %v3218_v46 = vpop.f32.mrf.mxu0 }
 0x155   : > { %v1294_v9 = vpop.f32.mrf.mxu1  ;;  %v3220_v0 = vpop.f32.mrf.mxu0 }
 0x157   : > { %v2245_v50 = vpop.f32.mrf.mxu1  ;;  %v3222_v2 = vpop.f32.mrf.mxu0 }
 0x159   : > { %v1307_v55 = vpop.f32.mrf.mxu1  ;;  %v3224_v21 = vpop.f32.mrf.mxu0 }
 0x15a   : > { %3453 = vst [vmem:[#allocation16_spill] sm:$0xff] %v3224_v21 }
 0x15b   : > { %v3226_v25 = vpop.f32.mrf.mxu1  ;;  %v3228_v15 = vpop.f32.mrf.mxu0 }
 0x15c   : > { %3454 = vst [vmem:[#allocation17_spill] sm:$0xff] %v3228_v15 }
 0x15d   : > { %v3230_v56 = vpop.f32.mrf.mxu1  ;;  %v3232_v28 = vpop.f32.mrf.mxu0 }
 0x15e   : > { %3455 = vst [vmem:[#allocation18_spill] sm:$0xff] %v3232_v28  ;;  %v1074_v28 = vadd.f32 %v1011_v3, %v3133_v8  ;;  %v1080_v8 = vadd.f32 %v2209_v5, %v3139_v22  ;;  %v1081_v22 = vadd.f32 %v3180_v16, %v3143_v57 }
 0x15f   : > { %v3234_v24 = vpop.f32.mrf.mxu1  ;;  %v3236_v48 = vpop.f32.mrf.mxu0 }
 0x160   : > { %3456 = vst [vmem:[#allocation19_spill] sm:$0xff] %v3236_v48  ;;  %v1224_v48 = vadd.f32 %v3157_v1, %v1076_v45  ;;  %v1222_v49 = vadd.f32 %v3161_v31, %v1074_v28  ;;  %v1228_v10 = vadd.f32 %v3172_v63, %v1080_v8 }
 0x161   : > { %v3238_v32 = vpop.f32.mrf.mxu1  ;;  %v3240_v4 = vpop.f32.mrf.mxu0 }
 0x162   : > { %3457 = vst [vmem:[#allocation20_spill] sm:$0xff] %v3238_v32  ;;  %3458 = vst [vmem:[#allocation21_spill] sm:$0xff] %v3240_v4  ;;  %v1077_v4 = vadd.f32 %v2206_v54, %v3135_v60  ;;  %v1354_v1 = vadd.f32 %v1291_v38, %v1222_v49  ;;  %v1078_v60 = vadd.f32 %v1027_v61, %v3141_v37 }
 0x163   : > { %v3242_v47 = vpop.f32.mrf.mxu1  ;;  %v3244_v41 = vpop.f32.mrf.mxu0  ;;  %v1079_v61 = vadd.f32 %v3184_v12, %v3145_v29 }
 0x164   : > { %3459 = vst [vmem:[#allocation22_spill] sm:$0xff] %v3242_v47  ;;  %3460 = vst [vmem:[#allocation23_spill] sm:$0xff] %v3244_v41  ;;  %v1226_v37 = vadd.f32 %v3174_v11, %v1078_v60  ;;  %v1084_v11 = vadd.f32 %v3188_v14, %v3147_v58 }
 0x165   : > { %v3247_v18 = vpop.f32.mrf.mxu1  ;;  %v3249_v15 = vpop.f32.mrf.mxu0 }
 0x166   : > { %3461 = vst [vmem:[#allocation24_spill] sm:$0xff] %v3249_v15  ;;  %v1356_v15 = vadd.f32 %v2241_v42, %v1224_v48  ;;  %v1358_v38 = vadd.f32 %v1307_v55, %v1226_v37  ;;  %v1232_v8 = vadd.f32 %v3182_v6, %v1084_v11 }
 0x167   : > { %v3252_v27 = vpop.f32.mrf.mxu1  ;;  %v3254_v21 = vpop.f32.mrf.mxu0 }
 0x168   : > { %3462 = vst [vmem:[#allocation25_spill] sm:$0xff] %v3254_v21  ;;  %v1225_v21 = vadd.f32 %v3166_v51, %v1077_v4  ;;  %v1482_v31 = vadd.f32 %v2259_v30, %v1356_v15  ;;  %v1480_v51 = vadd.f32 %v1417_v33, %v1354_v1  ;;  %v3282_v30 = vld [vmem:[%s3434_s2] ss:$0 sm:$0xff]  ;;  %v1085_v1 = vadd.f32 %v3196_v39, %v3151_v23 }
 0x169   : > { %v3258_v32 = vpop.f32.mrf.mxu1  ;;  %v3260_v47 = vpop.f32.mrf.mxu0  ;;  %v1083_v23 = vadd.f32 %v3200_v52, %v3153_v40  ;;  %v3465_v52 = vld [vmem:[#allocation20_spill] sm:$0xff] }
 0x16a   : > { %3463 = vst [vmem:[#allocation26_spill] sm:$0xff] %v3260_v47  ;;  %v1223_v47 = vadd.f32 %v3170_v19, %v1075_v62  ;;  %v1357_v28 = vadd.f32 %v2242_v43, %v1225_v21  ;;  %v1360_v19 = vadd.f32 %v2245_v50, %v1228_v10 }
 0x16b   : > { %v3265_v3 = vpop.f32.mrf.mxu1  ;;  %v2295_v41 = vpop.f32.mrf.mxu0 }
 0x16c   : > { %v1355_v5 = vadd.f32 %v1294_v9, %v1223_v47  ;;  %v1483_v57 = vadd.f32 %v2260_v36, %v1357_v28  ;;  %v1229_v47 = vadd.f32 %v3176_v59, %v1081_v22  ;;  %v1227_v36 = vadd.f32 %v3178_v34, %v1079_v61 }
 0x16d   : > { %v3269_v54 = vpop.f32.mrf.mxu1  ;;  %v1697_v45 = vpop.f32.mrf.mxu0  ;;  %v1486_v15 = vadd.f32 %v3218_v46, %v1360_v19  ;;  %v1484_v34 = vadd.f32 %v3220_v0, %v1358_v38 }
 0x16e   : > { %v1481_v43 = vadd.f32 %v3216_v7, %v1355_v5  ;;  %v1361_v59 = vadd.f32 %v3226_v25, %v1229_v47  ;;  %v3464_v5 = vld [vmem:[#allocation16_spill] sm:$0xff]  ;;  %v3469_v47 = vld [vmem:[#allocation17_spill] sm:$0xff] }
 0x16f   : > { %v2277_v48 = vpop.f32.mrf.mxu1  ;;  %v2296_v13 = vpop.f32.mrf.mxu0 }
 0x170   : > { %v1630_v4 = vadd.f32 %v2277_v48, %v1482_v31  ;;  %v1487_v39 = vadd.f32 %v3222_v2, %v1361_v59 }
 0x171   : > { %v1565_v63 = vpop.f32.mrf.mxu1  ;;  %v1700_v42 = vpop.f32.mrf.mxu0 }
 0x172   : > { %v1762_v16 = vadd.f32 %v2295_v41, %v1630_v4  ;;  %v1628_v33 = vadd.f32 %v1565_v63, %v1480_v51  ;;  %v1082_v41 = vadd.f32 %v3192_v26, %v3149_v35  ;;  %v1359_v35 = vadd.f32 %v3230_v56, %v1227_v36 }
 0x173   : > { %v2278_v29 = vpop.f32.mrf.mxu1  ;;  %v2299_v12 = vpop.f32.mrf.mxu0  ;;  %v1364_v56 = vadd.f32 %v3234_v24, %v1232_v8  ;;  %v1233_v51 = vadd.f32 %v3190_v53, %v1085_v1  ;;  %v3468_v53 = vld [vmem:[#allocation12_spill] sm:$0xff] }
 0x174   : > { %v1785_v9 = vadd.f32 %v3282_v30, %v1762_v16  ;;  %v1760_v50 = vadd.f32 %v1697_v45, %v1628_v33  ;;  %v1631_v21 = vadd.f32 %v2278_v29, %v1483_v57  ;;  %v1230_v6 = vadd.f32 %v3186_v20, %v1082_v41  ;;  %v3467_v16 = vld [vmem:[#allocation5_spill] sm:$0xff]  ;;  %v3472_v41 = vld [vmem:[#allocation6_spill] sm:$0xff] }
 0x175   : > { %v1568_v49 = vpop.f32.mrf.mxu1  ;;  %v1713_v58 = vpop.f32.mrf.mxu0  ;;  %v1088_v20 = vadd.f32 %v3204_v44, %v3155_v17  ;;  %v1485_v40 = vadd.f32 %v3464_v5, %v1359_v35  ;;  %v1086_v33 = vadd.f32 %v3468_v53, %v3467_v16  ;;  %v1490_v17 = vadd.f32 %v3469_v47, %v1364_v56  ;;  %v3470_v44 = vld [vmem:[#allocation22_spill] sm:$0xff]  ;;  %v3483_v53 = vld [vmem:[#allocation24_spill] sm:$0xff] }
 0x176   : > { %v1801_v14 = vmax.f32 %v1785_v9, 0.0  ;;  %v1783_v55 = vadd.f32 %v3282_v30, %v1760_v50  ;;  %v1763_v62 = vadd.f32 %v2296_v13, %v1631_v21  ;;  %v1629_v7 = vadd.f32 %v1568_v49, %v1481_v43  ;;  %v3471_v21 = vld [vmem:[#allocation9_spill] sm:$0xff]  ;;  %v3474_v49 = vld [vmem:[#allocation18_spill] sm:$0xff] }
 0x177   : > { %v2281_v26 = vpop.f32.mrf.mxu1  ;;  %v2300_v46 = vpop.f32.mrf.mxu0  ;;  %v1362_v2 = vadd.f32 %v3465_v52, %v1230_v6  ;;  %v1365_v11 = vadd.f32 %v3470_v44, %v1233_v51  ;;  %v1236_v36 = vadd.f32 %v3471_v21, %v1088_v20  ;;  %v3475_v35 = vld [vmem:[#allocation10_spill] sm:$0xff] }
 0x178   : > { %1817 = vst [vmem:[%s3302_s5 + $0x10] sm:$0xff] %v1801_v14  ;;  %v1799_v25 = vmax.f32 %v1783_v55, 0.0  ;;  %v1786_v60 = vadd.f32 %v3282_v30, %v1763_v62  ;;  %v1761_v45 = vadd.f32 %v1700_v42, %v1629_v7  ;;  %v1634_v31 = vadd.f32 %v2281_v26, %v1486_v15  ;;  %v3466_v42 = vld [vmem:[#allocation8_spill] sm:$0xff]  ;;  %v3473_v15 = vld [vmem:[#allocation14_spill] sm:$0xff] }
 0x179   : > { %v1581_v0 = vpop.f32.mrf.mxu1  ;;  %v1716_v28 = vpop.f32.mrf.mxu0  ;;  %v1231_v57 = vadd.f32 %v3466_v42, %v1083_v23  ;;  %v1089_v59 = vadd.f32 %v3473_v15, %v3472_v41  ;;  %v1234_v26 = vadd.f32 %v3475_v35, %v1086_v33  ;;  %v1368_v6 = vadd.f32 %v3252_v27, %v1236_v36  ;;  %v3485_v41 = vld [vmem:[#allocation26_spill] sm:$0xff] }
 0x17a   : > { %1815 = vst [vmem:[%s3302_s5] sm:$0xff] %v1799_v25  ;;  %v1802_v10 = vmax.f32 %v1786_v60, 0.0  ;;  %v1784_v22 = vadd.f32 %v3282_v30, %v1761_v45  ;;  %v1766_v48 = vadd.f32 %v2299_v12, %v1634_v31  ;;  %v1632_v13 = vadd.f32 %v1581_v0, %v1484_v34  ;;  %v3477_v25 = vld [vmem:[#allocation15_spill] sm:$0xff] }
 0x17b   : > { %v2282_v4 = vpop.f32.mrf.mxu1  ;;  %v2303_v24 = vpop.f32.mrf.mxu0  ;;  %v1363_v14 = vadd.f32 %v3247_v18, %v1231_v57  ;;  %v3478_v45 = vld [vmem:[#allocation19_spill] sm:$0xff]  ;;  %v1366_v51 = vadd.f32 %v3258_v32, %v1234_v26 }
 0x17c   : > { %1818 = vst [vmem:[%s3302_s5 + $0x18] sm:$0xff] %v1802_v10  ;;  %v1800_v37 = vmax.f32 %v1784_v22, 0.0  ;;  %v1789_v61 = vadd.f32 %v3282_v30, %v1766_v48  ;;  %v1764_v19 = vadd.f32 %v1713_v58, %v1632_v13  ;;  %v1635_v63 = vadd.f32 %v2282_v4, %v1487_v39  ;;  %v3479_v10 = vld [vmem:[#allocation11_spill] sm:$0xff]  ;;  %v3480_v48 = vld [vmem:[#allocation21_spill] sm:$0xff] }
 0x17d   : > { %v1584_v38 = vpop.f32.mrf.mxu1  ;;  %v1729_v29 = vpop.f32.mrf.mxu0  ;;  %v1488_v58 = vadd.f32 %v3474_v49, %v1362_v2  ;;  %v1491_v31 = vadd.f32 %v3478_v45, %v1365_v11  ;;  %v1237_v22 = vadd.f32 %v3479_v10, %v1089_v59  ;;  %v1489_v13 = vadd.f32 %v3480_v48, %v1363_v14  ;;  %v3481_v4 = vld [vmem:[#allocation13_spill] sm:$0xff] }
 0x17e   : > { %1816 = vst [vmem:[%s3302_s5 + $0x8] sm:$0xff] %v1800_v37  ;;  %v1805_v12 = vmax.f32 %v1789_v61, 0.0  ;;  %v1787_v43 = vadd.f32 %v3282_v30, %v1764_v19  ;;  %v1767_v9 = vadd.f32 %v2300_v46, %v1635_v63  ;;  %v1633_v50 = vadd.f32 %v1584_v38, %v1485_v40  ;;  %v3476_v46 = vld [vmem:[#allocation7_spill] sm:$0xff] }
 0x17f   : > { %v2285_v55 = vpop.f32.mrf.mxu1  ;;  %v2304_v62 = vpop.f32.mrf.mxu0  ;;  %v1087_v60 = vadd.f32 %v3477_v25, %v3476_v46  ;;  %v1369_v19 = vadd.f32 %v3265_v3, %v1237_v22  ;;  %v1492_v33 = vadd.f32 %v3483_v53, %v1366_v51 }
 0x180   : > { %1821 = vst [vmem:[%s3302_s5 + $0x30] sm:$0xff] %v1805_v12  ;;  %v1803_v7 = vmax.f32 %v1787_v43, 0.0  ;;  %v1790_v8 = vadd.f32 %v3282_v30, %v1767_v9  ;;  %v1765_v1 = vadd.f32 %v1716_v28, %v1633_v50  ;;  %v1638_v34 = vadd.f32 %v2285_v55, %v1490_v17  ;;  %v3484_v12 = vld [vmem:[#allocation25_spill] sm:$0xff] }
 0x181   : > { %v1597_v23 = vpop.f32.mrf.mxu1  ;;  %v1732_v18 = vpop.f32.mrf.mxu0  ;;  %v1235_v37 = vadd.f32 %v3481_v4, %v1087_v60  ;;  %v1495_v43 = vadd.f32 %v3484_v12, %v1369_v19 }
 0x182   : > { %1819 = vst [vmem:[%s3302_s5 + $0x20] sm:$0xff] %v1803_v7  ;;  %v1806_v39 = vmax.f32 %v1790_v8, 0.0  ;;  %v1788_v56 = vadd.f32 %v3282_v30, %v1765_v1  ;;  %v1770_v0 = vadd.f32 %v2303_v24, %v1638_v34  ;;  %v1636_v28 = vadd.f32 %v1597_v23, %v1488_v58  ;;  %v3482_v24 = vld [vmem:[#allocation23_spill] sm:$0xff] }
 0x183   : > { %v2286_v20 = vpop.f32.mrf.mxu1  ;;  %v2307_v5 = vpop.f32.mrf.mxu0  ;;  %v1494_v61 = vadd.f32 %v3482_v24, %v1368_v6  ;;  %v1367_v47 = vadd.f32 %v3269_v54, %v1235_v37 }
 0x184   : > { %1822 = vst [vmem:[%s3302_s5 + $0x38] sm:$0xff] %v1806_v39  ;;  %v1804_v40 = vmax.f32 %v1788_v56, 0.0  ;;  %v1793_v27 = vadd.f32 %v3282_v30, %v1770_v0  ;;  %v1768_v52 = vadd.f32 %v1729_v29, %v1636_v28  ;;  %v1639_v2 = vadd.f32 %v2286_v20, %v1491_v31 }
 0x185   : > { %v1600_v63 = vpop.f32.mrf.mxu1  ;;  %v1745_v44 = vpop.f32.mrf.mxu0  ;;  %v1493_v15 = vadd.f32 %v3485_v41, %v1367_v47 }
 0x186   : > { %1820 = vst [vmem:[%s3302_s5 + $0x28] sm:$0xff] %v1804_v40  ;;  %v1809_v42 = vmax.f32 %v1793_v27, 0.0  ;;  %v1791_v32 = vadd.f32 %v3282_v30, %v1768_v52  ;;  %v1771_v57 = vadd.f32 %v2304_v62, %v1639_v2  ;;  %v1637_v16 = vadd.f32 %v1600_v63, %v1489_v13 }
 0x187   : > { %v2289_v17 = vpop.f32.mrf.mxu1  ;;  %v2308_v49 = vpop.f32.mrf.mxu0 }
 0x188   : > { %1825 = vst [vmem:[%s3302_s5 + $0x50] sm:$0xff] %v1809_v42  ;;  %v1807_v11 = vmax.f32 %v1791_v32, 0.0  ;;  %v1794_v3 = vadd.f32 %v3282_v30, %v1771_v57  ;;  %v1769_v38 = vadd.f32 %v1732_v18, %v1637_v16  ;;  %v1642_v29 = vadd.f32 %v2289_v17, %v1494_v61 }
 0x189   : > { %v1613_v9 = vpop.f32.mrf.mxu1  ;;  %v1748_v26 = vpop.f32.mrf.mxu0 }
 0x18a   : > { %1823 = vst [vmem:[%s3302_s5 + $0x40] sm:$0xff] %v1807_v11  ;;  %v1810_v50 = vmax.f32 %v1794_v3, 0.0  ;;  %v1792_v21 = vadd.f32 %v3282_v30, %v1769_v38  ;;  %v1774_v36 = vadd.f32 %v2307_v5, %v1642_v29  ;;  %v1640_v54 = vadd.f32 %v1613_v9, %v1492_v33 }
 0x18b   : > { %v2290_v59 = vpop.f32.mrf.mxu1 }
 0x18c   : > { %1826 = vst [vmem:[%s3302_s5 + $0x58] sm:$0xff] %v1810_v50  ;;  %v1808_v58 = vmax.f32 %v1792_v21, 0.0  ;;  %v1797_v14 = vadd.f32 %v3282_v30, %v1774_v36  ;;  %v1772_v55 = vadd.f32 %v1745_v44, %v1640_v54  ;;  %v1643_v62 = vadd.f32 %v2290_v59, %v1495_v43 }
 0x18d   : > { %v1616_v7 = vpop.f32.mrf.mxu1 }
 0x18e   : > { %1824 = vst [vmem:[%s3302_s5 + $0x48] sm:$0xff] %v1808_v58  ;;  %v1813_v8 = vmax.f32 %v1797_v14, 0.0  ;;  %v1795_v1 = vadd.f32 %v3282_v30, %v1772_v55  ;;  %v1775_v34 = vadd.f32 %v2308_v49, %v1643_v62  ;;  %v1641_v35 = vadd.f32 %v1616_v7, %v1493_v15 }
 0x190   : > { %1829 = vst [vmem:[%s3302_s5 + $0x70] sm:$0xff] %v1813_v8  ;;  %v1811_v46 = vmax.f32 %v1795_v1, 0.0  ;;  %v1798_v25 = vadd.f32 %v3282_v30, %v1775_v34  ;;  %v1773_v60 = vadd.f32 %v1748_v26, %v1641_v35 }
 0x192   : > { %1827 = vst [vmem:[%s3302_s5 + $0x60] sm:$0xff] %v1811_v46  ;;  %v1814_v45 = vmax.f32 %v1798_v25, 0.0  ;;  %v1796_v31 = vadd.f32 %v3282_v30, %v1773_v60 }
 0x194   : > { %1830 = vst [vmem:[%s3302_s5 + $0x78] sm:$0xff] %v1814_v45  ;;  %v1812_v6 = vmax.f32 %v1796_v31, 0.0 }
 0x196   : > { %1828 = vst [vmem:[%s3302_s5 + $0x68] sm:$0xff] %v1812_v6 }
 0x197   : > { %2418 = shalt.err (!%p2415_p6)
}
 0x198   : > { %s2419_s27 = scalar_lea.hbm %s3373_s11, 2048  ;;  %s2423_s6 = scalar_lea.hbm %s3435_s3, 8192 }
 0x199   : > { %p2420_p7 = scmp.ne.s32.totalorder %s3373_s11, %s2419_s27  ;;  %p2424_p11 = scmp.lt.s32.totalorder %s3373_s11, %s3435_s3 }
 0x19a   : > { %p2425_p12 = scmp.lt.s32.totalorder %s2423_s6, %s2419_s27 }
 0x19b   : > { %p2421_p9 = pnand %p2420_p7, %p2573_p3 }
 0x19c   : > { %p2426_p13 = por %p2425_p12, %p2424_p11 }
 0x19d   : > { %p2422_p10 = pneg %p2421_p9 }
 0x19f   : > { %p2427_p0 = pnand %p2426_p13, %p2422_p10 }
 0x1a1   : > { %2430 = shalt.err (!%p2427_p0)
}
 0x1a2   : > { %s2500_s15 = smov 128   ;;  %s2501_s9 = smov 8  }
 0x1a3   : > { %2322 = dma.vmem_to_hbm [thread:$0]  (%p2573_p3), %s3375_s16, 2048, %s3373_s11, %s3381_s20, %s2500_s15, %s2500_s15, %s2501_s9  }
 0x1a4 PF: > { %p2328_p1 = scmp.ge.s32.totalorder %s2497_s19, 2  ;;  %s1863_s10 = sand.u32 1, %s2469_s12  }
 0x1a5   : > { %s1864_s21 = scalar_lea.sflag [#allocation3], %s1863_s10 }
 0x1a6   : > { %p2325_p2 = pnand %p2328_p1, %p2582_p8 }
 0x1a8   : > { %p2326_p4 = pneg %p2325_p2 }
 0x1aa   : > { %2464 = dma.done.wait (%p2326_p4), %s1864_s21, 2048  }
 0x1ab   : > { %2466 = vsyncadd (%p2326_p4), %s1864_s21, 4294965248  ;;  %s16_s19 = sadd.s32 1, %s2497_s19   ;;  %s3486_s12 = smov %s2473_s13 }
 0x1ac   : > { %p13_p5 = scmp.ge.s32.totalorder %s16_s19, 6   ;;  %s3487_s13 = smov %s2477_s14 }
 0x1ad   : > { %s3488_s14 = smov %s2591_s30  ;;  %s3489_s15 = smov %s2489_s17 }
 0x1ae   : > { %s3490_s16 = smov %s2493_s18  ;;  %s3491_s17 = smov %s3494_s22 }
 0x1af   : > { %s3492_s18 = smov %s3498_s23  ;;  %15 = sbr.rel (!%p13_p5) target bundleno = 5 (0x5), region = 76 }
 0x1b4   :  { %1869 = vsyncpa [#allocation3], 1 }
 0x1b5   :  { %1871 = vsyncpa [#allocation3 + $0x1], 1 }

</bundles_post_ra>
